<compile_context>
chip_gen: v5e
topology: v5e:2x2
jax: 0.10.0
libtpu: 0.0.40
codegen_flags: <defaults>
</compile_context>

<pallas_src>
import jax
import jax.numpy as jnp
from jax.experimental import pallas as pl
from jax.experimental.pallas import tpu as pltpu


def _round_up(v, m):
    return ((v + m - 1) // m) * m


def _mlp_kernel(x_ref, w1_ref, b1_ref, w2_ref, b2_ref, w3_ref, b3_ref, o_ref):
    # x_ref:  [TM, F]  bf16      w1_ref: [F, 512]  bf16   b1_ref: [1, 512] f32
    # w2_ref: [512, 256] bf16    b2_ref: [1, 256] f32
    # w3_ref: [1, 256] f32       b3_ref: [1, 1] f32 (SMEM scalar)
    # o_ref:  [TM, 128] f32 (lane-dense; real result lives in column 0)
    x = x_ref[...]

    # Layer 1: bf16 MXU matmul, f32 accumulation, bias, LeakyReLU(0.2).
    h1 = jnp.dot(x, w1_ref[...], preferred_element_type=jnp.float32) + b1_ref[...]
    h1 = jnp.maximum(h1, 0.2 * h1)

    # Layer 2: same pattern (h1 fed back to the MXU as bf16).
    h2 = jnp.dot(h1.astype(jnp.bfloat16), w2_ref[...],
                 preferred_element_type=jnp.float32) + b2_ref[...]
    h2 = jnp.maximum(h2, 0.2 * h2)

    # Layer 3 (out_features == 1): VPU multiply + XLU lane reduce instead of a
    # 1-lane MXU matmul.  b3 comes from SMEM as a scalar.
    out = jnp.sum(h2 * w3_ref[...], axis=-1, keepdims=True) + b3_ref[0, 0]

    # Lane-dense store; the wrapper slices column 0.
    o_ref[...] = jnp.broadcast_to(out, o_ref.shape).astype(o_ref.dtype)


def critic_forward(x, params, *, block_rows=128):
    """x: [B, C, H, W] (or already [B, F]). Returns [B, 1] float32."""
    w1, b1, w2, b2, w3, b3 = params
    f_in, h1_dim = w1.shape
    h2_dim = w2.shape[1]

    b = x.shape[0]
    x_flat = x.reshape(b, -1)                       # == input.view(B, -1)
    assert x_flat.shape[1] == f_in

    # Batch tile: multiple of 8 sublanes, at most `block_rows` (128 default).
    tm = min(block_rows, _round_up(b, 8))
    b_pad = _round_up(b, tm)

    # bf16 at the boundary (f32 accumulation happens inside the kernel).
    xb = x_flat.astype(jnp.bfloat16)
    if b_pad != b:
        xb = jnp.pad(xb, ((0, b_pad - b), (0, 0)))
    w1b = w1.astype(jnp.bfloat16)
    w2b = w2.astype(jnp.bfloat16)
    b1f = b1.reshape(1, h1_dim).astype(jnp.float32)
    b2f = b2.reshape(1, h2_dim).astype(jnp.float32)
    w3r = w3.reshape(1, h2_dim).astype(jnp.float32)     # row vector for VPU reduce
    b3s = b3.reshape(1, 1).astype(jnp.float32)

    out_lanes = 128

    # VMEM budget: resident weights + double-buffered x/out tiles + activations.
    est = (f_in * h1_dim * 2 + h1_dim * h2_dim * 2            # W1, W2 (bf16)
           + (h1_dim + 2 * h2_dim) * 4                        # b1, b2, w3 (f32)
           + 2 * tm * f_in * 2                                # x tiles (double-buffered)
           + 2 * tm * out_lanes * 4                           # out tiles
           + tm * (h1_dim + h2_dim) * 4)                      # h1/h2 temporaries
    vmem_limit = int(min(max(2 * est, 32 << 20), 48 << 20))   # fits v7x's 64 MiB VMEM

    out = pl.pallas_call(
        _mlp_kernel,
        out_shape=jax.ShapeDtypeStruct((b_pad, out_lanes), jnp.float32),
        grid=(b_pad // tm,),
        in_specs=[
            pl.BlockSpec((tm, f_in), lambda i: (i, 0)),       # x: tiled over batch
            pl.BlockSpec((f_in, h1_dim), lambda i: (0, 0)),   # W1: resident
            pl.BlockSpec((1, h1_dim), lambda i: (0, 0)),      # b1: resident
            pl.BlockSpec((h1_dim, h2_dim), lambda i: (0, 0)), # W2: resident
            pl.BlockSpec((1, h2_dim), lambda i: (0, 0)),      # b2: resident
            pl.BlockSpec((1, h2_dim), lambda i: (0, 0)),      # w3 row: resident
            pl.BlockSpec(memory_space=pltpu.MemorySpace.SMEM),  # b3 scalar
        ],
        out_specs=pl.BlockSpec((tm, out_lanes), lambda i: (i, 0)),
        compiler_params=pltpu.CompilerParams(
            dimension_semantics=("parallel",),     # v7x: shard batch across 2 TCs
            vmem_limit_bytes=vmem_limit,
        ),
    )(xb, w1b, b1f, w2b, b2f, w3r, b3s)

    return out[:b, :1]


def init_critic_params(num_features, key):
    """Deterministic init mimicking PyTorch nn.Linear default (U[-1/sqrt(fan_in), +])."""
    def linear(key, fan_in, fan_out):
        kw, kb = jax.random.split(key)
        bound = 1.0 / (fan_in ** 0.5)
        w = jax.random.uniform(kw, (fan_in, fan_out), jnp.float32, -bound, bound)
        b = jax.random.uniform(kb, (1, fan_out), jnp.float32, -bound, bound)
        return w, b

    k1, k2, k3 = jax.random.split(key, 3)
    w1, b1 = linear(k1, num_features, 512)
    w2, b2 = linear(k2, 512, 256)
    w3, b3 = linear(k3, 256, 1)
    return (w1, b1, w2, b2, w3, b3)


if __name__ == "__main__":
    key = jax.random.PRNGKey(0)
    k_x, k_p = jax.random.split(key)

    # Small NCHW input consistent with the module's flatten-then-MLP forward.
    B, C, H, W = 2, 4, 16, 16
    num_features = C * H * W                      # 1024
    x = jax.random.normal(k_x, (B, C, H, W), jnp.float32)

    params = init_critic_params(num_features, k_p)

    out = critic_forward(x, params)
    out = jax.block_until_ready(out)
    assert out.shape == (B, 1)

    w1, b1, w2, b2, w3, b3 = params
    xf = x.reshape(B, -1)

    # Reference 1: same bf16-input / f32-accumulation path as the kernel.
    h1 = jnp.dot(xf.astype(jnp.bfloat16), w1.astype(jnp.bfloat16),
                 preferred_element_type=jnp.float32) + b1
    h1 = jnp.maximum(h1, 0.2 * h1)
    h2 = jnp.dot(h1.astype(jnp.bfloat16), w2.astype(jnp.bfloat16),
                 preferred_element_type=jnp.float32) + b2
    h2 = jnp.maximum(h2, 0.2 * h2)
    ref_bf16 = h2 @ w3 + b3
    assert jnp.allclose(out, ref_bf16, atol=2e-3, rtol=2e-3)

    # Reference 2: pure f32 (PyTorch module semantics), loose tolerance for the
    # bf16 boundary cast.
    r = xf @ w1 + b1
    r = jnp.where(r > 0, r, 0.2 * r)
    r = r @ w2 + b2
    r = jnp.where(r > 0, r, 0.2 * r)
    ref_f32 = r @ w3 + b3
    assert jnp.allclose(out, ref_f32, atol=5e-2, rtol=5e-2)

    print("KERNEL_OK")
</pallas_src>

<mosaic_0001>
module attributes {stable_mosaic.version = 11 : i64} {
  func.func @_mlp_kernel(%arg0: i32, %arg1: memref<8x1024xbf16, #tpu.memory_space<vmem>>, %arg2: memref<1024x512xbf16, #tpu.memory_space<vmem>>, %arg3: memref<1x512xf32, #tpu.memory_space<vmem>>, %arg4: memref<512x256xbf16, #tpu.memory_space<vmem>>, %arg5: memref<1x256xf32, #tpu.memory_space<vmem>>, %arg6: memref<1x256xf32, #tpu.memory_space<vmem>>, %arg7: memref<1x1xf32, #tpu.memory_space<smem>>, %arg8: memref<8x128xf32, #tpu.memory_space<vmem>>) attributes {dimension_semantics = [#tpu.dimension_semantics<parallel>], iteration_bounds = array<i64: 1>, scalar_prefetch = 0 : i64, scratch_operands = 0 : i64, tpu.core_type = #tpu.core_type<tc>, window_params = [{transform_indices = @transform_0, window_bounds = array<i64: 8, 1024>}, {pipeline_mode = #tpu.pipeline_mode<synchronous>, transform_indices = @transform_1, window_bounds = array<i64: 1024, 512>}, {pipeline_mode = #tpu.pipeline_mode<synchronous>, transform_indices = @transform_2, window_bounds = array<i64: 1, 512>}, {pipeline_mode = #tpu.pipeline_mode<synchronous>, transform_indices = @transform_3, window_bounds = array<i64: 512, 256>}, {pipeline_mode = #tpu.pipeline_mode<synchronous>, transform_indices = @transform_4, window_bounds = array<i64: 1, 256>}, {pipeline_mode = #tpu.pipeline_mode<synchronous>, transform_indices = @transform_5, window_bounds = array<i64: 1, 256>}, {transform_indices = @transform_6, window_bounds = array<i64: 1, 1>}, {transform_indices = @transform_7, window_bounds = array<i64: 8, 128>}]} {
    %c0 = arith.constant 0 : index
    %c0_0 = arith.constant 0 : index
    %0 = vector.load %arg1[%c0, %c0_0] : memref<8x1024xbf16, #tpu.memory_space<vmem>>, vector<8x1024xbf16>
    %c0_1 = arith.constant 0 : index
    %c0_2 = arith.constant 0 : index
    %1 = vector.load %arg2[%c0_1, %c0_2] : memref<1024x512xbf16, #tpu.memory_space<vmem>>, vector<1024x512xbf16>
    %cst = arith.constant dense<0.000000e+00> : vector<8x512xf32>
    %2 = tpu.matmul %0, %1, %cst {dimension_numbers = #tpu.dot_dimension_numbers<[1], [0], [0], [1], [0, 0, 1, 1], [], []>} : vector<8x1024xbf16>, vector<1024x512xbf16>, vector<8x512xf32> -> vector<8x512xf32>
    %c0_3 = arith.constant 0 : index
    %c0_4 = arith.constant 0 : index
    %3 = vector.load %arg3[%c0_3, %c0_4] : memref<1x512xf32, #tpu.memory_space<vmem>>, vector<1x512xf32>
    %4 = vector.broadcast %3 : vector<1x512xf32> to vector<8x512xf32>
    %5 = arith.addf %2, %4 : vector<8x512xf32>
    %cst_5 = arith.constant 2.000000e-01 : f32
    %6 = vector.broadcast %cst_5 : f32 to vector<8x512xf32>
    %7 = arith.mulf %6, %5 : vector<8x512xf32>
    %8 = arith.maximumf %5, %7 : vector<8x512xf32>
    %9 = arith.truncf %8 : vector<8x512xf32> to vector<8x512xbf16>
    %c0_6 = arith.constant 0 : index
    %c0_7 = arith.constant 0 : index
    %10 = vector.load %arg4[%c0_6, %c0_7] : memref<512x256xbf16, #tpu.memory_space<vmem>>, vector<512x256xbf16>
    %cst_8 = arith.constant dense<0.000000e+00> : vector<8x256xf32>
    %11 = tpu.matmul %9, %10, %cst_8 {dimension_numbers = #tpu.dot_dimension_numbers<[1], [0], [0], [1], [0, 0, 1, 1], [], []>} : vector<8x512xbf16>, vector<512x256xbf16>, vector<8x256xf32> -> vector<8x256xf32>
    %c0_9 = arith.constant 0 : index
    %c0_10 = arith.constant 0 : index
    %12 = vector.load %arg5[%c0_9, %c0_10] : memref<1x256xf32, #tpu.memory_space<vmem>>, vector<1x256xf32>
    %13 = vector.broadcast %12 : vector<1x256xf32> to vector<8x256xf32>
    %14 = arith.addf %11, %13 : vector<8x256xf32>
    %cst_11 = arith.constant 2.000000e-01 : f32
    %15 = vector.broadcast %cst_11 : f32 to vector<8x256xf32>
    %16 = arith.mulf %15, %14 : vector<8x256xf32>
    %17 = arith.maximumf %14, %16 : vector<8x256xf32>
    %c0_12 = arith.constant 0 : index
    %c0_13 = arith.constant 0 : index
    %18 = vector.load %arg6[%c0_12, %c0_13] : memref<1x256xf32, #tpu.memory_space<vmem>>, vector<1x256xf32>
    %19 = vector.broadcast %18 : vector<1x256xf32> to vector<8x256xf32>
    %20 = arith.mulf %17, %19 : vector<8x256xf32>
    %cst_14 = arith.constant dense<0.000000e+00> : vector<8xf32>
    %21 = vector.multi_reduction <add>, %20, %cst_14 [1] : vector<8x256xf32> to vector<8xf32>
    %22 = vector.shape_cast %21 : vector<8xf32> to vector<8x1xf32>
    %c0_15 = arith.constant 0 : index
    %c0_16 = arith.constant 0 : index
    %23 = memref.load %arg7[%c0_15, %c0_16] : memref<1x1xf32, #tpu.memory_space<smem>>
    %24 = vector.broadcast %23 : f32 to vector<8x1xf32>
    %25 = arith.addf %22, %24 : vector<8x1xf32>
    %26 = vector.shape_cast %25 : vector<8x1xf32> to vector<8x1xf32>
    %27 = vector.broadcast %26 : vector<8x1xf32> to vector<8x128xf32>
    %c0_17 = arith.constant 0 : index
    %c0_18 = arith.constant 0 : index
    %28 = vector.load %arg8[%c0_17, %c0_18] : memref<8x128xf32, #tpu.memory_space<vmem>>, vector<8x128xf32>
    tpu.vector_store %arg8[%c0_17, %c0_18], %27 {strides = array<i32>} : memref<8x128xf32, #tpu.memory_space<vmem>>, vector<8x128xf32>,
    return
  }
  func.func @transform_0(%arg0: i32) -> (i32, i32) {
    %c0_i32 = arith.constant 0 : i32
    %c0_i32_0 = arith.constant 0 : i32
    return %arg0, %c0_i32 : i32, i32
  }
  func.func @transform_1(%arg0: i32) -> (i32, i32) {
    %c0_i32 = arith.constant 0 : i32
    %c0_i32_0 = arith.constant 0 : i32
    %c0_i32_1 = arith.constant 0 : i32
    return %c0_i32, %c0_i32_0 : i32, i32
  }
  func.func @transform_2(%arg0: i32) -> (i32, i32) {
    %c0_i32 = arith.constant 0 : i32
    %c0_i32_0 = arith.constant 0 : i32
    %c0_i32_1 = arith.constant 0 : i32
    return %c0_i32, %c0_i32_0 : i32, i32
  }
  func.func @transform_3(%arg0: i32) -> (i32, i32) {
    %c0_i32 = arith.constant 0 : i32
    %c0_i32_0 = arith.constant 0 : i32
    %c0_i32_1 = arith.constant 0 : i32
    return %c0_i32, %c0_i32_0 : i32, i32
  }
  func.func @transform_4(%arg0: i32) -> (i32, i32) {
    %c0_i32 = arith.constant 0 : i32
    %c0_i32_0 = arith.constant 0 : i32
    %c0_i32_1 = arith.constant 0 : i32
    return %c0_i32, %c0_i32_0 : i32, i32
  }
  func.func @transform_5(%arg0: i32) -> (i32, i32) {
    %c0_i32 = arith.constant 0 : i32
    %c0_i32_0 = arith.constant 0 : i32
    %c0_i32_1 = arith.constant 0 : i32
    return %c0_i32, %c0_i32_0 : i32, i32
  }
  func.func @transform_6(%arg0: i32) -> (i32, i32) {
    %c0_i32 = arith.constant 0 : i32
    %c0_i32_0 = arith.constant 0 : i32
    %c0_i32_1 = arith.constant 0 : i32
    return %c0_i32, %c0_i32_0 : i32, i32
  }
  func.func @transform_7(%arg0: i32) -> (i32, i32) {
    %c0_i32 = arith.constant 0 : i32
    %c0_i32_0 = arith.constant 0 : i32
    return %arg0, %c0_i32 : i32, i32
  }
}

</mosaic_0001>

<bundles_post_ra>
// kernel: tpu_custom_call.1
= control target key start
LH: loop header
LB: loop body
LE: loop exit
PB: predicated region body
PF: predicated region fallthrough
CT: control target
= control target key end

     0   :  { %13 = vsyncpa [#allocation4], 0  ;;  %s4519_s0 = inlined_call_operand.hbm [shape: bf16[8,1024], index: 0, kind: input, shape index: {}]   ;;  %s4520_s1 = inlined_call_operand.hbm [shape: bf16[1024,512], index: 1, kind: input, shape index: {}]   ;;  %s4521_s2 = inlined_call_operand.hbm [shape: f32[1,512], index: 2, kind: input, shape index: {}]   ;;  %s4522_s3 = inlined_call_operand.hbm [shape: bf16[512,256], index: 3, kind: input, shape index: {}]   ;;  %s4523_s4 = inlined_call_operand.vmem [shape: f32[1,256], index: 4, kind: input, shape index: {}]   ;;  %s4524_s5 = inlined_call_operand.vmem [shape: f32[1,256], index: 5, kind: input, shape index: {}]   ;;  %s4525_s6 = inlined_call_operand.<no memory space> [shape: f32[1,1], index: 6, kind: input, shape index: {}]   ;;  %s4526_s7 = inlined_call_operand.hbm [shape: f32[8,128], index: 7, kind: output, shape index: {}]  }
   0x1   :  { %14 = vsyncpa [#allocation7], 0 }
   0x2   :  { %15 = vsyncpa [#allocation10], 0  ;;  %s32_s26 = sshll.u32 %s4520_s1, 4  ;;  %s33_s26 = int_to_ptr.hbm [resolvable:$true] %s32_s26 }
   0x3   :  { %16 = vsyncpa [#allocation5], 0  ;;  %s4363_s27 = smov [#allocation6]   ;;  %s22_s8 = sshll.u32 %s4519_s0, 4  ;;  %s23_s8 = int_to_ptr.hbm [resolvable:$true] %s22_s8 }
   0x4   :  { %s34_s28 = sshll.u32 %s4363_s27, 4  ;;  %s4364_s9 = smov 256   ;;  %s35_s28 = int_to_ptr.vmem [resolvable:$true] %s34_s28 }
   0x5   :  { %s4365_s10 = smov 16   ;;  %s4366_s11 = smov [#allocation3]  }
   0x6   :  { %40 = dma.hbm_to_vmem [thread:$0]  %s33_s26, 32768, %s35_s28, [#allocation7], %s4364_s9, %s4364_s9, %s4365_s10  }
   0x7   :  { %s24_s12 = sshll.u32 %s4366_s11, 4  ;;  %s46_s15 = sshll.u32 %s4521_s2, 4  ;;  %s25_s12 = int_to_ptr.vmem [resolvable:$true] %s24_s12  ;;  %s47_s15 = int_to_ptr.hbm [resolvable:$true] %s46_s15 }
   0x8   :  { %27 = dma.hbm_to_vmem [thread:$0]  %s23_s8, 512, %s25_s12, [#allocation4]  }
   0x9   :  { %s56_s17 = sshll.u32 %s4522_s3, 4  ;;  %s4367_s18 = smov [#allocation8]   ;;  %s57_s17 = int_to_ptr.hbm [resolvable:$true] %s56_s17 }
   0xa   :  { %s48_s19 = sshll.u32 %s4367_s18, 4  ;;  %s4368_s0 = smov [#allocation9]   ;;  %s49_s19 = int_to_ptr.vmem [resolvable:$true] %s48_s19 }
   0xb   :  { %51 = dma.hbm_to_vmem [thread:$0]  %s47_s15, 64, %s49_s19, [#allocation7]  }
   0xc   :  { %s58_s20 = sshll.u32 %s4368_s0, 4  ;;  %s4369_s21 = smov 128   ;;  %s59_s20 = int_to_ptr.vmem [resolvable:$true] %s58_s20 }
   0xd   :  { %s4370_s22 = smov 8  }
   0xe   :  { %64 = dma.hbm_to_vmem [thread:$0]  %s57_s17, 8192, %s59_s20, [#allocation10], %s4369_s21, %s4369_s21, %s4370_s22  }
   0xf   :  { %4355 = dma.done.wait [#allocation4], 512  }
  0x10   :  { %4356 = vsyncadd [#allocation4], 4294966784 }
  0x11   :  { %4357 = dma.done.wait [#allocation7], 32832  }
  0x12   :  { %4358 = vsyncadd [#allocation7], 4294934464 }
  0x13   :  { %4359 = dma.done.wait [#allocation10], 8192  }
  0x14   :  { %4360 = vsyncadd [#allocation10], 4294959104  ;;  %v2739_v0 = vld [vmem:[#allocation6 + $0xe0] sm:$0xf]  ;;  %v3935_v1 = vld [vmem:[#allocation6 + $0xec] sm:$0xf0] }
  0x15   :  { %v2867_v2 = vld [vmem:[#allocation6 + $0x1e0] sm:$0xf]  ;;  %v2740_v3 = vor.u32 %v3935_v1, %v2739_v0  ;;  %v3967_v4 = vld [vmem:[#allocation6 + $0x1ec] sm:$0xf0]  ;;  %s4371_s26 = smov [#allocation11]  }
  0x16   :  { %v2995_v5 = vld [vmem:[#allocation6 + $0x2e0] sm:$0xf]  ;;  %v3999_v6 = vld [vmem:[#allocation6 + $0x2ec] sm:$0xf0]  ;;  %v2868_v7 = vor.u32 %v3967_v4, %v2867_v2  ;;  %s2611_s27 = sshll.u32 %s4371_s26, 4  ;;  %s2612_s27 = int_to_ptr.vmem [resolvable:$true] %s2611_s27 }
  0x17   :  { %v2996_v8 = vor.u32 %v3999_v6, %v2995_v5  ;;  %v3123_v9 = vld [vmem:[#allocation6 + $0x3e0] sm:$0xf]  ;;  %v4031_v10 = vld [vmem:[#allocation6 + $0x3ec] sm:$0xf0]  ;;  %1665 = vmatpush.bf16.msra.mxu0 %v2740_v3 }
  0x18   :  { %v2723_v11 = vld [vmem:[#allocation6 + $0xc0] sm:$0xf]  ;;  %v3124_v12 = vor.u32 %v4031_v10, %v3123_v9  ;;  %v3931_v13 = vld [vmem:[#allocation6 + $0xcc] sm:$0xf0]  ;;  %1678 = vmatpush.bf16.msra.mxu1 %v2868_v7 }
  0x19   :  { %v2851_v14 = vld [vmem:[#allocation6 + $0x1c0] sm:$0xf]  ;;  %v3963_v15 = vld [vmem:[#allocation6 + $0x1cc] sm:$0xf0]  ;;  %1691 = vmatpush.bf16.msra.mxu2 %v2996_v8  ;;  %v2724_v16 = vor.u32 %v3931_v13, %v2723_v11 }
  0x1a   :  { %v2852_v17 = vor.u32 %v3963_v15, %v2851_v14  ;;  %v2979_v18 = vld [vmem:[#allocation6 + $0x2c0] sm:$0xf]  ;;  %v3995_v19 = vld [vmem:[#allocation6 + $0x2cc] sm:$0xf0]  ;;  %1704 = vmatpush.bf16.msra.mxu3 %v3124_v12 }
  0x1b   :  { %v3107_v20 = vld [vmem:[#allocation6 + $0x3c0] sm:$0xf]  ;;  %v2980_v21 = vor.u32 %v3995_v19, %v2979_v18  ;;  %v4027_v22 = vld [vmem:[#allocation6 + $0x3cc] sm:$0xf0]  ;;  %1666 = vmatpush.bf16.msra.mxu0 %v2724_v16 }
  0x1c   :  { %v2707_v23 = vld [vmem:[#allocation6 + $0xa0] sm:$0xf]  ;;  %v3927_v24 = vld [vmem:[#allocation6 + $0xac] sm:$0xf0]  ;;  %v3108_v25 = vor.u32 %v4027_v22, %v3107_v20  ;;  %1679 = vmatpush.bf16.msra.mxu1 %v2852_v17 }
  0x1d   :  { %v2835_v26 = vld [vmem:[#allocation6 + $0x1a0] sm:$0xf]  ;;  %v3959_v27 = vld [vmem:[#allocation6 + $0x1ac] sm:$0xf0]  ;;  %v2708_v29 = vor.u32 %v3927_v24, %v2707_v23  ;;  %1692 = vmatpush.bf16.msra.mxu2 %v2980_v21 }
  0x1e   :  { %v2963_v28 = vld [vmem:[#allocation6 + $0x2a0] sm:$0xf]  ;;  %v3991_v30 = vld [vmem:[#allocation6 + $0x2ac] sm:$0xf0]  ;;  %v2836_v33 = vor.u32 %v3959_v27, %v2835_v26  ;;  %1705 = vmatpush.bf16.msra.mxu3 %v3108_v25 }
  0x1f   :  { %v3091_v31 = vld [vmem:[#allocation6 + $0x3a0] sm:$0xf]  ;;  %v4023_v32 = vld [vmem:[#allocation6 + $0x3ac] sm:$0xf0]  ;;  %v2964_v34 = vor.u32 %v3991_v30, %v2963_v28  ;;  %1667 = vmatpush.bf16.msra.mxu0 %v2708_v29 }
  0x20   :  { %v2691_v35 = vld [vmem:[#allocation6 + $0x80] sm:$0xf]  ;;  %v3923_v36 = vld [vmem:[#allocation6 + $0x8c] sm:$0xf0]  ;;  %v3092_v38 = vor.u32 %v4023_v32, %v3091_v31  ;;  %1680 = vmatpush.bf16.msra.mxu1 %v2836_v33 }
  0x21   :  { %v2819_v37 = vld [vmem:[#allocation6 + $0x180] sm:$0xf]  ;;  %v3955_v39 = vld [vmem:[#allocation6 + $0x18c] sm:$0xf0]  ;;  %v2692_v44 = vor.u32 %v3923_v36, %v2691_v35  ;;  %1693 = vmatpush.bf16.msra.mxu2 %v2964_v34 }
  0x22   :  { %v2947_v40 = vld [vmem:[#allocation6 + $0x280] sm:$0xf]  ;;  %v3987_v41 = vld [vmem:[#allocation6 + $0x28c] sm:$0xf0]  ;;  %v2820_v45 = vor.u32 %v3955_v39, %v2819_v37  ;;  %1706 = vmatpush.bf16.msra.mxu3 %v3092_v38 }
  0x23   :  { %v3075_v42 = vld [vmem:[#allocation6 + $0x380] sm:$0xf]  ;;  %v4019_v43 = vld [vmem:[#allocation6 + $0x38c] sm:$0xf0]  ;;  %v2948_v46 = vor.u32 %v3987_v41, %v2947_v40  ;;  %1668 = vmatpush.bf16.msra.mxu0 %v2692_v44 }
  0x24   :  { %v2675_v47 = vld [vmem:[#allocation6 + $0x60] sm:$0xf]  ;;  %v3919_v48 = vld [vmem:[#allocation6 + $0x6c] sm:$0xf0]  ;;  %v3076_v50 = vor.u32 %v4019_v43, %v3075_v42  ;;  %1681 = vmatpush.bf16.msra.mxu1 %v2820_v45 }
  0x25   :  { %v2803_v49 = vld [vmem:[#allocation6 + $0x160] sm:$0xf]  ;;  %v3951_v51 = vld [vmem:[#allocation6 + $0x16c] sm:$0xf0]  ;;  %v2676_v56 = vor.u32 %v3919_v48, %v2675_v47  ;;  %1694 = vmatpush.bf16.msra.mxu2 %v2948_v46 }
  0x26   :  { %v2931_v52 = vld [vmem:[#allocation6 + $0x260] sm:$0xf]  ;;  %v3983_v53 = vld [vmem:[#allocation6 + $0x26c] sm:$0xf0]  ;;  %v2804_v57 = vor.u32 %v3951_v51, %v2803_v49  ;;  %1707 = vmatpush.bf16.msra.mxu3 %v3076_v50 }
  0x27   :  { %v3059_v54 = vld [vmem:[#allocation6 + $0x360] sm:$0xf]  ;;  %v4015_v55 = vld [vmem:[#allocation6 + $0x36c] sm:$0xf0]  ;;  %v2932_v58 = vor.u32 %v3983_v53, %v2931_v52  ;;  %1669 = vmatpush.bf16.msra.mxu0 %v2676_v56 }
  0x28   :  { %v2659_v59 = vld [vmem:[#allocation6 + $0x40] sm:$0xf]  ;;  %v3915_v60 = vld [vmem:[#allocation6 + $0x4c] sm:$0xf0]  ;;  %v3060_v62 = vor.u32 %v4015_v55, %v3059_v54  ;;  %1682 = vmatpush.bf16.msra.mxu1 %v2804_v57 }
  0x29   :  { %v2787_v61 = vld [vmem:[#allocation6 + $0x140] sm:$0xf]  ;;  %v3947_v63 = vld [vmem:[#allocation6 + $0x14c] sm:$0xf0]  ;;  %v2660_v4 = vor.u32 %v3915_v60, %v2659_v59  ;;  %1695 = vmatpush.bf16.msra.mxu2 %v2932_v58  ;;  %v88_v58 = vld [vmem:[#allocation3 + $0x8] sm:$0xff] }
  0x2a   :  { %v2915_v0 = vld [vmem:[#allocation6 + $0x240] sm:$0xf]  ;;  %v3979_v1 = vld [vmem:[#allocation6 + $0x24c] sm:$0xf0]  ;;  %v2788_v5 = vor.u32 %v3947_v63, %v2787_v61  ;;  %1708 = vmatpush.bf16.msra.mxu3 %v3060_v62  ;;  %v363_v63 = vunpack.c.l.b16 %v88_v58 }
  0x2b   :  { %v3043_v2 = vld [vmem:[#allocation6 + $0x340] sm:$0xf]  ;;  %v4011_v3 = vld [vmem:[#allocation6 + $0x34c] sm:$0xf0]  ;;  %v2916_v6 = vor.u32 %v3979_v1, %v2915_v0  ;;  %1670 = vmatpush.bf16.msra.mxu0 %v2660_v4  ;;  %v364_v0 = vunpack.c.h.b16 %v88_v58 }
  0x2c   :  { %v2643_v7 = vld [vmem:[#allocation6 + $0x20] sm:$0xf]  ;;  %v3911_v8 = vld [vmem:[#allocation6 + $0x2c] sm:$0xf0]  ;;  %v3044_v10 = vor.u32 %v4011_v3, %v3043_v2  ;;  %1683 = vmatpush.bf16.msra.mxu1 %v2788_v5  ;;  %v4424_v4 = vpack.c.b16 %v363_v63, %v363_v63 }
  0x2d   :  { %v2771_v9 = vld [vmem:[#allocation6 + $0x120] sm:$0xf]  ;;  %v3943_v11 = vld [vmem:[#allocation6 + $0x12c] sm:$0xf0]  ;;  %v2644_v16 = vor.u32 %v3911_v8, %v2643_v7  ;;  %1696 = vmatpush.bf16.msra.mxu2 %v2916_v6  ;;  %v4426_v6 = vpack.c.b16 %v364_v0, %v364_v0 }
  0x2e   :  { %v2899_v12 = vld [vmem:[#allocation6 + $0x220] sm:$0xf]  ;;  %v3975_v13 = vld [vmem:[#allocation6 + $0x22c] sm:$0xf0]  ;;  %v2772_v19 = vor.u32 %v3943_v11, %v2771_v9  ;;  %1709 = vmatpush.bf16.msra.mxu3 %v3044_v10 }
  0x2f   :  { %v3027_v14 = vld [vmem:[#allocation6 + $0x320] sm:$0xf]  ;;  %v4007_v15 = vld [vmem:[#allocation6 + $0x32c] sm:$0xf0]  ;;  %v2900_v20 = vor.u32 %v3975_v13, %v2899_v12  ;;  %1671 = vmatpush.bf16.msra.mxu0 %v2644_v16 }
  0x30   :  { %v2627_v17 = vld [vmem:[#allocation6] sm:$0xf]  ;;  %v3907_v18 = vld [vmem:[#allocation6 + $0xc] sm:$0xf0]  ;;  %v3028_v24 = vor.u32 %v4007_v15, %v3027_v14  ;;  %1684 = vmatpush.bf16.msra.mxu1 %v2772_v19 }
  0x31   :  { %v2755_v21 = vld [vmem:[#allocation6 + $0x100] sm:$0xf]  ;;  %v3939_v22 = vld [vmem:[#allocation6 + $0x10c] sm:$0xf0]  ;;  %v2628_v31 = vor.u32 %v3907_v18, %v2627_v17  ;;  %1697 = vmatpush.bf16.msra.mxu2 %v2900_v20 }
  0x32   :  { %v2883_v23 = vld [vmem:[#allocation6 + $0x200] sm:$0xf]  ;;  %v3971_v25 = vld [vmem:[#allocation6 + $0x20c] sm:$0xf0]  ;;  %v2756_v35 = vor.u32 %v3939_v22, %v2755_v21  ;;  %1710 = vmatpush.bf16.msra.mxu3 %v3028_v24 }
  0x33   :  { %v3011_v26 = vld [vmem:[#allocation6 + $0x300] sm:$0xf]  ;;  %v4003_v27 = vld [vmem:[#allocation6 + $0x30c] sm:$0xf0]  ;;  %v2884_v36 = vor.u32 %v3971_v25, %v2883_v23  ;;  %1672 = vmatpush.bf16.msra.mxu0 %v2628_v31 }
  0x34   :  { %v3251_v28 = vld [vmem:[#allocation6 + $0x4e0] sm:$0xf]  ;;  %v4063_v29 = vld [vmem:[#allocation6 + $0x4ec] sm:$0xf0]  ;;  %v3012_v39 = vor.u32 %v4003_v27, %v3011_v26  ;;  %1685 = vmatpush.bf16.msra.mxu1 %v2756_v35 }
  0x35   :  { %v3379_v30 = vld [vmem:[#allocation6 + $0x5e0] sm:$0xf]  ;;  %v4095_v32 = vld [vmem:[#allocation6 + $0x5ec] sm:$0xf0]  ;;  %v3252_v40 = vor.u32 %v4063_v29, %v3251_v28  ;;  %1698 = vmatpush.bf16.msra.mxu2 %v2884_v36 }
  0x36   :  { %v3507_v33 = vld [vmem:[#allocation6 + $0x6e0] sm:$0xf]  ;;  %v4127_v34 = vld [vmem:[#allocation6 + $0x6ec] sm:$0xf0]  ;;  %v3380_v41 = vor.u32 %v4095_v32, %v3379_v30  ;;  %1711 = vmatpush.bf16.msra.mxu3 %v3012_v39 }
  0x37   :  { %v3635_v37 = vld [vmem:[#allocation6 + $0x7e0] sm:$0xf]  ;;  %v4159_v38 = vld [vmem:[#allocation6 + $0x7ec] sm:$0xf0]  ;;  %v3508_v42 = vor.u32 %v4127_v34, %v3507_v33  ;;  %1717 = vmatpush.bf16.msrb.mxu0 %v3252_v40 }
  0x38   :  { %v3235_v43 = vld [vmem:[#allocation6 + $0x4c0] sm:$0xf]  ;;  %v4059_v44 = vld [vmem:[#allocation6 + $0x4cc] sm:$0xf0]  ;;  %v3636_v46 = vor.u32 %v4159_v38, %v3635_v37  ;;  %1730 = vmatpush.bf16.msrb.mxu1 %v3380_v41  ;;  %1699 = vmatmul.bf16.vlgmr.msra.gmra.mxu2 %v4424_v4 }
  0x39   :  { %v3363_v45 = vld [vmem:[#allocation6 + $0x5c0] sm:$0xf]  ;;  %v4091_v47 = vld [vmem:[#allocation6 + $0x5cc] sm:$0xf0]  ;;  %v3236_v52 = vor.u32 %v4059_v44, %v3235_v43  ;;  %1743 = vmatpush.bf16.msrb.mxu2 %v3508_v42  ;;  %1712 = vmatmul.bf16.vlgmr.msra.gmra.mxu3 %v4426_v6 }
  0x3a   :  { %v3491_v48 = vld [vmem:[#allocation6 + $0x6c0] sm:$0xf]  ;;  %v4123_v49 = vld [vmem:[#allocation6 + $0x6cc] sm:$0xf0]  ;;  %v3364_v54 = vor.u32 %v4091_v47, %v3363_v45  ;;  %1756 = vmatpush.bf16.msrb.mxu3 %v3636_v46 }
  0x3b   :  { %v3619_v50 = vld [vmem:[#allocation6 + $0x7c0] sm:$0xf]  ;;  %v4155_v51 = vld [vmem:[#allocation6 + $0x7cc] sm:$0xf0]  ;;  %v3492_v55 = vor.u32 %v4123_v49, %v3491_v48  ;;  %1718 = vmatpush.bf16.msrb.mxu0 %v3236_v52 }
  0x3c   :  { %v3219_v53 = vld [vmem:[#allocation6 + $0x4a0] sm:$0xf]  ;;  %v4055_v56 = vld [vmem:[#allocation6 + $0x4ac] sm:$0xf0]  ;;  %v3620_v59 = vor.u32 %v4155_v51, %v3619_v50  ;;  %1731 = vmatpush.bf16.msrb.mxu1 %v3364_v54 }
  0x3d   :  { %v3347_v57 = vld [vmem:[#allocation6 + $0x5a0] sm:$0xf]  ;;  %v4087_v60 = vld [vmem:[#allocation6 + $0x5ac] sm:$0xf0]  ;;  %v3220_v3 = vor.u32 %v4055_v56, %v3219_v53  ;;  %1744 = vmatpush.bf16.msrb.mxu2 %v3492_v55 }
  0x3e   :  { %v3475_v61 = vld [vmem:[#allocation6 + $0x6a0] sm:$0xf]  ;;  %v4119_v62 = vld [vmem:[#allocation6 + $0x6ac] sm:$0xf0]  ;;  %v3348_v7 = vor.u32 %v4087_v60, %v3347_v57  ;;  %1757 = vmatpush.bf16.msrb.mxu3 %v3620_v59 }
  0x3f   :  { %v3603_v1 = vld [vmem:[#allocation6 + $0x7a0] sm:$0xf]  ;;  %v4151_v2 = vld [vmem:[#allocation6 + $0x7ac] sm:$0xf0]  ;;  %v3476_v8 = vor.u32 %v4119_v62, %v3475_v61  ;;  %1719 = vmatpush.bf16.msrb.mxu0 %v3220_v3  ;;  %v90_v3 = vld [vmem:[#allocation3 + $0x18] sm:$0xff] }
  0x40   :  { %v87_v5 = vld [vmem:[#allocation3] sm:$0xff]  ;;  %v4051_v10 = vld [vmem:[#allocation6 + $0x48c] sm:$0xf0]  ;;  %v3604_v14 = vor.u32 %v4151_v2, %v3603_v1  ;;  %1732 = vmatpush.bf16.msrb.mxu1 %v3348_v7 }
  0x41   :  { %v3203_v9 = vld [vmem:[#allocation6 + $0x480] sm:$0xf]  ;;  %v361_v12 = vunpack.c.l.b16 %v87_v5  ;;  %v362_v13 = vunpack.c.h.b16 %v87_v5  ;;  %v4083_v15 = vld [vmem:[#allocation6 + $0x58c] sm:$0xf0]  ;;  %1745 = vmatpush.bf16.msrb.mxu2 %v3476_v8 }
  0x42   :  { %v3331_v11 = vld [vmem:[#allocation6 + $0x580] sm:$0xf]  ;;  %v4115_v17 = vld [vmem:[#allocation6 + $0x68c] sm:$0xf0]  ;;  %v3204_v22 = vor.u32 %v4051_v10, %v3203_v9  ;;  %1758 = vmatpush.bf16.msrb.mxu3 %v3604_v14  ;;  %v3933_v10 = vld [vmem:[#allocation6 + $0xe4] sm:$0xf] }
  0x43   :  { %v3459_v16 = vld [vmem:[#allocation6 + $0x680] sm:$0xf]  ;;  %v4147_v19 = vld [vmem:[#allocation6 + $0x78c] sm:$0xf0]  ;;  %v4429_v20 = vpack.c.b16 %v361_v12, %v361_v12  ;;  %v4432_v21 = vpack.c.b16 %v362_v13, %v362_v13  ;;  %v3332_v23 = vor.u32 %v4083_v15, %v3331_v11  ;;  %v2741_v11 = vld [vmem:[#allocation6 + $0xf0] sm:$0xf0] }
  0x44   :  { %v3587_v18 = vld [vmem:[#allocation6 + $0x780] sm:$0xf]  ;;  %v3460_v24 = vor.u32 %v4115_v17, %v3459_v16  ;;  %v4047_v26 = vld [vmem:[#allocation6 + $0x46c] sm:$0xf0]  ;;  %1720 = vmatpush.bf16.msrb.mxu0 %v3204_v22  ;;  %v3965_v12 = vld [vmem:[#allocation6 + $0x1e4] sm:$0xf]  ;;  %v367_v17 = vunpack.c.l.b16 %v90_v3 }
  0x45   :  { %v3187_v25 = vld [vmem:[#allocation6 + $0x460] sm:$0xf]  ;;  %v3588_v28 = vor.u32 %v4147_v19, %v3587_v18  ;;  %v4079_v29 = vld [vmem:[#allocation6 + $0x56c] sm:$0xf0]  ;;  %1673 = vmatmul.bf16.vlgmr.msra.gmra.mxu0 %v4429_v20  ;;  %1686 = vmatmul.bf16.vlgmr.msra.gmra.mxu1 %v4432_v21  ;;  %v2869_v14 = vld [vmem:[#allocation6 + $0x1f0] sm:$0xf0] }
  0x46   :  { %v3315_v27 = vld [vmem:[#allocation6 + $0x560] sm:$0xf]  ;;  %v4111_v31 = vld [vmem:[#allocation6 + $0x66c] sm:$0xf0]  ;;  %v3188_v34 = vor.u32 %v4047_v26, %v3187_v25  ;;  %1733 = vmatpush.bf16.msrb.mxu1 %v3332_v23  ;;  %1746 = vmatpush.bf16.msrb.mxu2 %v3460_v24  ;;  %v3997_v15 = vld [vmem:[#allocation6 + $0x2e4] sm:$0xf]  ;;  %v368_v25 = vunpack.c.h.b16 %v90_v3 }
  0x47   :  { %v3443_v30 = vld [vmem:[#allocation6 + $0x660] sm:$0xf]  ;;  %v4143_v33 = vld [vmem:[#allocation6 + $0x76c] sm:$0xf0]  ;;  %v3316_v35 = vor.u32 %v4079_v29, %v3315_v27  ;;  %1759 = vmatpush.bf16.msrb.mxu3 %v3588_v28  ;;  %v2997_v16 = vld [vmem:[#allocation6 + $0x2f0] sm:$0xf0]  ;;  %v2744_v27 = vor.u32 %v3933_v10, %v2741_v11  ;;  %v2872_v29 = vor.u32 %v3965_v12, %v2869_v14 }
  0x48   :  { %v3571_v32 = vld [vmem:[#allocation6 + $0x760] sm:$0xf]  ;;  %v3444_v36 = vor.u32 %v4111_v31, %v3443_v30  ;;  %v4043_v38 = vld [vmem:[#allocation6 + $0x44c] sm:$0xf0]  ;;  %1721 = vmatpush.bf16.msrb.mxu0 %v3188_v34  ;;  %v4029_v22 = vld [vmem:[#allocation6 + $0x3e4] sm:$0xf]  ;;  %v3000_v30 = vor.u32 %v3997_v15, %v2997_v16 }
  0x49   :  { %v3171_v37 = vld [vmem:[#allocation6 + $0x440] sm:$0xf]  ;;  %v3572_v40 = vor.u32 %v4143_v33, %v3571_v32  ;;  %v4075_v41 = vld [vmem:[#allocation6 + $0x54c] sm:$0xf0]  ;;  %v3125_v23 = vld [vmem:[#allocation6 + $0x3f0] sm:$0xf0] }
  0x4a   :  { %v3299_v39 = vld [vmem:[#allocation6 + $0x540] sm:$0xf]  ;;  %v4107_v43 = vld [vmem:[#allocation6 + $0x64c] sm:$0xf0]  ;;  %v3172_v46 = vor.u32 %v4043_v38, %v3171_v37  ;;  %1734 = vmatpush.bf16.msrb.mxu1 %v3316_v35  ;;  %1747 = vmatpush.bf16.msrb.mxu2 %v3444_v36  ;;  %v3929_v31 = vld [vmem:[#allocation6 + $0xc4] sm:$0xf]  ;;  %v3128_v34 = vor.u32 %v4029_v22, %v3125_v23  ;;  %v4436_v38 = vpack.c.b16 %v367_v17, %v367_v17 }
  0x4b   :  { %v3427_v42 = vld [vmem:[#allocation6 + $0x640] sm:$0xf]  ;;  %v4139_v45 = vld [vmem:[#allocation6 + $0x74c] sm:$0xf0]  ;;  %v3300_v47 = vor.u32 %v4075_v41, %v3299_v39  ;;  %1760 = vmatpush.bf16.msrb.mxu3 %v3572_v40  ;;  %v2725_v32 = vld [vmem:[#allocation6 + $0xd0] sm:$0xf0] }
  0x4c   :  { %v3555_v44 = vld [vmem:[#allocation6 + $0x740] sm:$0xf]  ;;  %v3428_v48 = vor.u32 %v4107_v43, %v3427_v42  ;;  %v4039_v50 = vld [vmem:[#allocation6 + $0x42c] sm:$0xf0]  ;;  %1722 = vmatpush.bf16.msrb.mxu0 %v3172_v46  ;;  %v3961_v33 = vld [vmem:[#allocation6 + $0x1c4] sm:$0xf]  ;;  %v4440_v42 = vpack.c.b16 %v368_v25, %v368_v25  ;;  %v2728_v43 = vor.u32 %v3929_v31, %v2725_v32 }
  0x4d   :  { %v3155_v49 = vld [vmem:[#allocation6 + $0x420] sm:$0xf]  ;;  %v3556_v52 = vor.u32 %v4139_v45, %v3555_v44  ;;  %v4071_v53 = vld [vmem:[#allocation6 + $0x52c] sm:$0xf0]  ;;  %v2853_v35 = vld [vmem:[#allocation6 + $0x1d0] sm:$0xf0] }
  0x4e   :  { %v3283_v51 = vld [vmem:[#allocation6 + $0x520] sm:$0xf]  ;;  %v4103_v55 = vld [vmem:[#allocation6 + $0x62c] sm:$0xf0]  ;;  %v3156_v59 = vor.u32 %v4039_v50, %v3155_v49  ;;  %1735 = vmatpush.bf16.msrb.mxu1 %v3300_v47  ;;  %1748 = vmatpush.bf16.msrb.mxu2 %v3428_v48  ;;  %v3993_v36 = vld [vmem:[#allocation6 + $0x2c4] sm:$0xf]  ;;  %v2856_v45 = vor.u32 %v3961_v33, %v2853_v35 }
  0x4f   :  { %v3411_v54 = vld [vmem:[#allocation6 + $0x620] sm:$0xf]  ;;  %v4135_v57 = vld [vmem:[#allocation6 + $0x72c] sm:$0xf0]  ;;  %v3284_v63 = vor.u32 %v4071_v53, %v3283_v51  ;;  %1761 = vmatpush.bf16.msrb.mxu3 %v3556_v52  ;;  %v2981_v37 = vld [vmem:[#allocation6 + $0x2d0] sm:$0xf0] }
  0x50   :  { %v3539_v56 = vld [vmem:[#allocation6 + $0x720] sm:$0xf]  ;;  %v4035_v60 = vld [vmem:[#allocation6 + $0x40c] sm:$0xf0]  ;;  %v3412_v0 = vor.u32 %v4103_v55, %v3411_v54  ;;  %1723 = vmatpush.bf16.msrb.mxu0 %v3156_v59  ;;  %v4025_v39 = vld [vmem:[#allocation6 + $0x3c4] sm:$0xf]  ;;  %v2984_v46 = vor.u32 %v3993_v36, %v2981_v37 }
  0x51   :  { %v3139_v58 = vld [vmem:[#allocation6 + $0x400] sm:$0xf]  ;;  %v4067_v62 = vld [vmem:[#allocation6 + $0x50c] sm:$0xf0]  ;;  %v3540_v5 = vor.u32 %v4135_v57, %v3539_v56  ;;  %v3109_v40 = vld [vmem:[#allocation6 + $0x3d0] sm:$0xf0] }
  0x52   :  { %v3267_v61 = vld [vmem:[#allocation6 + $0x500] sm:$0xf]  ;;  %v4099_v2 = vld [vmem:[#allocation6 + $0x60c] sm:$0xf0]  ;;  %v3140_v13 = vor.u32 %v4035_v60, %v3139_v58  ;;  %1736 = vmatpush.bf16.msrb.mxu1 %v3284_v63  ;;  %1749 = vmatpush.bf16.msrb.mxu2 %v3412_v0  ;;  %v3925_v47 = vld [vmem:[#allocation6 + $0xa4] sm:$0xf]  ;;  %v3112_v50 = vor.u32 %v4025_v39, %v3109_v40 }
  0x53   :  { %v3395_v1 = vld [vmem:[#allocation6 + $0x600] sm:$0xf]  ;;  %v4131_v8 = vld [vmem:[#allocation6 + $0x70c] sm:$0xf0]  ;;  %v3268_v18 = vor.u32 %v4067_v62, %v3267_v61  ;;  %1762 = vmatpush.bf16.msrb.mxu3 %v3540_v5  ;;  %v2709_v48 = vld [vmem:[#allocation6 + $0xb0] sm:$0xf0] }
  0x54   :  { %v3523_v7 = vld [vmem:[#allocation6 + $0x700] sm:$0xf]  ;;  %v89_v9 = vld [vmem:[#allocation3 + $0x10] sm:$0xff]  ;;  %v3396_v19 = vor.u32 %v4099_v2, %v3395_v1  ;;  %1724 = vmatpush.bf16.msrb.mxu0 %v3140_v13  ;;  %v3957_v49 = vld [vmem:[#allocation6 + $0x1a4] sm:$0xf]  ;;  %v2712_v56 = vor.u32 %v3925_v47, %v2709_v48 }
  0x55   :  { %v365_v24 = vunpack.c.l.b16 %v89_v9  ;;  %v3524_v26 = vor.u32 %v4131_v8, %v3523_v7  ;;  %v366_v28 = vunpack.c.h.b16 %v89_v9  ;;  %v2837_v51 = vld [vmem:[#allocation6 + $0x1b0] sm:$0xf0]  ;;  %v3989_v52 = vld [vmem:[#allocation6 + $0x2a4] sm:$0xf] }
  0x56   :  { %1737 = vmatpush.bf16.msrb.mxu1 %v3268_v18  ;;  %1750 = vmatpush.bf16.msrb.mxu2 %v3396_v19  ;;  %v2965_v53 = vld [vmem:[#allocation6 + $0x2b0] sm:$0xf0]  ;;  %v4021_v54 = vld [vmem:[#allocation6 + $0x3a4] sm:$0xf]  ;;  %v2840_v57 = vor.u32 %v3957_v49, %v2837_v51 }
  0x57   :  { %v4438_v41 = vpack.c.b16 %v365_v24, %v365_v24  ;;  %1763 = vmatpush.bf16.msrb.mxu3 %v3524_v26  ;;  %v4442_v44 = vpack.c.b16 %v366_v28, %v366_v28  ;;  %v3093_v55 = vld [vmem:[#allocation6 + $0x3b0] sm:$0xf0]  ;;  %v2968_v58 = vor.u32 %v3989_v52, %v2965_v53  ;;  %v3921_v59 = vld [vmem:[#allocation6 + $0x84] sm:$0xf] }
  0x58   :  { %1769 = vmatpush.bf16.msra.mxu0 %v2744_v27  ;;  %v2693_v60 = vld [vmem:[#allocation6 + $0x90] sm:$0xf0]  ;;  %v3953_v61 = vld [vmem:[#allocation6 + $0x184] sm:$0xf]  ;;  %v3096_v62 = vor.u32 %v4021_v54, %v3093_v55 }
  0x59   :  { %1751 = vmatmul.bf16.vlgmr.msrb.gmra.mxu2 %v4436_v38  ;;  %1725 = vmatmul.bf16.vlgmr.msrb.gmra.mxu0 %v4438_v41  ;;  %v2821_v63 = vld [vmem:[#allocation6 + $0x190] sm:$0xf0]  ;;  %v3985_v0 = vld [vmem:[#allocation6 + $0x284] sm:$0xf]  ;;  %v2696_v5 = vor.u32 %v3921_v59, %v2693_v60 }
  0x5a   :  { %1782 = vmatpush.bf16.msra.mxu1 %v2872_v29  ;;  %1795 = vmatpush.bf16.msra.mxu2 %v3000_v30  ;;  %v2949_v1 = vld [vmem:[#allocation6 + $0x290] sm:$0xf0]  ;;  %v4017_v2 = vld [vmem:[#allocation6 + $0x384] sm:$0xf]  ;;  %v2824_v7 = vor.u32 %v3953_v61, %v2821_v63 }
  0x5b   :  { %1808 = vmatpush.bf16.msra.mxu3 %v3128_v34  ;;  %1738 = vmatmul.bf16.vlgmr.msrb.gmra.mxu1 %v4442_v44  ;;  %v3077_v3 = vld [vmem:[#allocation6 + $0x390] sm:$0xf0]  ;;  %v2952_v8 = vor.u32 %v3985_v0, %v2949_v1  ;;  %v3917_v9 = vld [vmem:[#allocation6 + $0x64] sm:$0xf] }
  0x5c   :  { %1764 = vmatmul.bf16.vlgmr.msrb.gmra.mxu3 %v4440_v42  ;;  %1770 = vmatpush.bf16.msra.mxu0 %v2728_v43  ;;  %v2677_v10 = vld [vmem:[#allocation6 + $0x70] sm:$0xf0]  ;;  %v3949_v11 = vld [vmem:[#allocation6 + $0x164] sm:$0xf]  ;;  %v3080_v12 = vor.u32 %v4017_v2, %v3077_v3 }
  0x5d   :  { %v2805_v13 = vld [vmem:[#allocation6 + $0x170] sm:$0xf0]  ;;  %v3981_v14 = vld [vmem:[#allocation6 + $0x264] sm:$0xf]  ;;  %v2680_v18 = vor.u32 %v3917_v9, %v2677_v10 }
  0x5e   :  { %1783 = vmatpush.bf16.msra.mxu1 %v2856_v45  ;;  %1796 = vmatpush.bf16.msra.mxu2 %v2984_v46  ;;  %v2933_v15 = vld [vmem:[#allocation6 + $0x270] sm:$0xf0]  ;;  %v4013_v16 = vld [vmem:[#allocation6 + $0x364] sm:$0xf]  ;;  %v2808_v19 = vor.u32 %v3949_v11, %v2805_v13 }
  0x5f   :  { %1809 = vmatpush.bf16.msra.mxu3 %v3112_v50  ;;  %v3061_v17 = vld [vmem:[#allocation6 + $0x370] sm:$0xf0]  ;;  %v2936_v22 = vor.u32 %v3981_v14, %v2933_v15  ;;  %v3913_v23 = vld [vmem:[#allocation6 + $0x44] sm:$0xf] }
  0x60   :  { %1771 = vmatpush.bf16.msra.mxu0 %v2712_v56  ;;  %v2661_v24 = vld [vmem:[#allocation6 + $0x50] sm:$0xf0]  ;;  %v3945_v25 = vld [vmem:[#allocation6 + $0x144] sm:$0xf]  ;;  %v3064_v26 = vor.u32 %v4013_v16, %v3061_v17 }
  0x61   :  { %v2789_v27 = vld [vmem:[#allocation6 + $0x150] sm:$0xf0]  ;;  %v3977_v28 = vld [vmem:[#allocation6 + $0x244] sm:$0xf]  ;;  %v2664_v32 = vor.u32 %v3913_v23, %v2661_v24 }
  0x62   :  { %1784 = vmatpush.bf16.msra.mxu1 %v2840_v57  ;;  %1797 = vmatpush.bf16.msra.mxu2 %v2968_v58  ;;  %v2917_v29 = vld [vmem:[#allocation6 + $0x250] sm:$0xf0]  ;;  %v4009_v30 = vld [vmem:[#allocation6 + $0x344] sm:$0xf]  ;;  %v2792_v33 = vor.u32 %v3945_v25, %v2789_v27 }
  0x63   :  { %1810 = vmatpush.bf16.msra.mxu3 %v3096_v62  ;;  %v3045_v31 = vld [vmem:[#allocation6 + $0x350] sm:$0xf0]  ;;  %v2920_v34 = vor.u32 %v3977_v28, %v2917_v29  ;;  %v3909_v35 = vld [vmem:[#allocation6 + $0x24] sm:$0xf] }
  0x64   :  { %1772 = vmatpush.bf16.msra.mxu0 %v2696_v5  ;;  %v2645_v36 = vld [vmem:[#allocation6 + $0x30] sm:$0xf0]  ;;  %v3941_v37 = vld [vmem:[#allocation6 + $0x124] sm:$0xf]  ;;  %v3048_v39 = vor.u32 %v4009_v30, %v3045_v31 }
  0x65   :  { %v2773_v40 = vld [vmem:[#allocation6 + $0x130] sm:$0xf0]  ;;  %v3973_v43 = vld [vmem:[#allocation6 + $0x224] sm:$0xf]  ;;  %v2648_v48 = vor.u32 %v3909_v35, %v2645_v36 }
  0x66   :  { %1785 = vmatpush.bf16.msra.mxu1 %v2824_v7  ;;  %1798 = vmatpush.bf16.msra.mxu2 %v2952_v8  ;;  %v2901_v45 = vld [vmem:[#allocation6 + $0x230] sm:$0xf0]  ;;  %v4005_v46 = vld [vmem:[#allocation6 + $0x324] sm:$0xf]  ;;  %v2776_v51 = vor.u32 %v3941_v37, %v2773_v40 }
  0x67   :  { %1811 = vmatpush.bf16.msra.mxu3 %v3080_v12  ;;  %v3029_v47 = vld [vmem:[#allocation6 + $0x330] sm:$0xf0]  ;;  %v3905_v49 = vld [vmem:[#allocation6 + $0x4] sm:$0xf]  ;;  %v2904_v52 = vor.u32 %v3973_v43, %v2901_v45 }
  0x68   :  { %1773 = vmatpush.bf16.msra.mxu0 %v2680_v18  ;;  %v2629_v50 = vld [vmem:[#allocation6 + $0x10] sm:$0xf0]  ;;  %v3937_v53 = vld [vmem:[#allocation6 + $0x104] sm:$0xf]  ;;  %v3032_v56 = vor.u32 %v4005_v46, %v3029_v47 }
  0x69   :  { %v2757_v54 = vld [vmem:[#allocation6 + $0x110] sm:$0xf0]  ;;  %v3969_v55 = vld [vmem:[#allocation6 + $0x204] sm:$0xf]  ;;  %v2632_v63 = vor.u32 %v3905_v49, %v2629_v50 }
  0x6a   :  { %1786 = vmatpush.bf16.msra.mxu1 %v2808_v19  ;;  %1799 = vmatpush.bf16.msra.mxu2 %v2936_v22  ;;  %v2885_v57 = vld [vmem:[#allocation6 + $0x210] sm:$0xf0]  ;;  %v4001_v58 = vld [vmem:[#allocation6 + $0x304] sm:$0xf]  ;;  %v2760_v3 = vor.u32 %v3937_v53, %v2757_v54 }
  0x6b   :  { %1812 = vmatpush.bf16.msra.mxu3 %v3064_v26  ;;  %v3013_v59 = vld [vmem:[#allocation6 + $0x310] sm:$0xf0]  ;;  %v4061_v60 = vld [vmem:[#allocation6 + $0x4e4] sm:$0xf]  ;;  %v2888_v5 = vor.u32 %v3969_v55, %v2885_v57 }
  0x6c   :  { %1774 = vmatpush.bf16.msra.mxu0 %v2664_v32  ;;  %v3253_v61 = vld [vmem:[#allocation6 + $0x4f0] sm:$0xf0]  ;;  %v4093_v62 = vld [vmem:[#allocation6 + $0x5e4] sm:$0xf]  ;;  %v3016_v9 = vor.u32 %v4001_v58, %v3013_v59 }
  0x6d   :  { %v3381_v0 = vld [vmem:[#allocation6 + $0x5f0] sm:$0xf0]  ;;  %v4125_v1 = vld [vmem:[#allocation6 + $0x6e4] sm:$0xf]  ;;  %v3256_v10 = vor.u32 %v4061_v60, %v3253_v61 }
  0x6e   :  { %1787 = vmatpush.bf16.msra.mxu1 %v2792_v33  ;;  %1800 = vmatpush.bf16.msra.mxu2 %v2920_v34  ;;  %v3509_v2 = vld [vmem:[#allocation6 + $0x6f0] sm:$0xf0]  ;;  %v4157_v7 = vld [vmem:[#allocation6 + $0x7e4] sm:$0xf]  ;;  %v3384_v11 = vor.u32 %v4093_v62, %v3381_v0 }
  0x6f   :  { %1813 = vmatpush.bf16.msra.mxu3 %v3048_v39  ;;  %v3637_v8 = vld [vmem:[#allocation6 + $0x7f0] sm:$0xf0]  ;;  %v3512_v12 = vor.u32 %v4125_v1, %v3509_v2  ;;  %v4057_v13 = vld [vmem:[#allocation6 + $0x4c4] sm:$0xf] }
  0x70   :  { %1775 = vmatpush.bf16.msra.mxu0 %v2648_v48  ;;  %v3237_v14 = vld [vmem:[#allocation6 + $0x4d0] sm:$0xf0]  ;;  %v4089_v15 = vld [vmem:[#allocation6 + $0x5c4] sm:$0xf]  ;;  %v3640_v16 = vor.u32 %v4157_v7, %v3637_v8 }
  0x71   :  { %v3365_v17 = vld [vmem:[#allocation6 + $0x5d0] sm:$0xf0]  ;;  %v4121_v18 = vld [vmem:[#allocation6 + $0x6c4] sm:$0xf]  ;;  %v3240_v24 = vor.u32 %v4057_v13, %v3237_v14 }
  0x72   :  { %1788 = vmatpush.bf16.msra.mxu1 %v2776_v51  ;;  %1801 = vmatpush.bf16.msra.mxu2 %v2904_v52  ;;  %v3493_v19 = vld [vmem:[#allocation6 + $0x6d0] sm:$0xf0]  ;;  %v4153_v22 = vld [vmem:[#allocation6 + $0x7c4] sm:$0xf]  ;;  %v3368_v25 = vor.u32 %v4089_v15, %v3365_v17 }
  0x73   :  { %1814 = vmatpush.bf16.msra.mxu3 %v3032_v56  ;;  %v3621_v23 = vld [vmem:[#allocation6 + $0x7d0] sm:$0xf0]  ;;  %v3496_v26 = vor.u32 %v4121_v18, %v3493_v19  ;;  %v4053_v27 = vld [vmem:[#allocation6 + $0x4a4] sm:$0xf] }
  0x74   :  { %1776 = vmatpush.bf16.msra.mxu0 %v2632_v63  ;;  %v3221_v28 = vld [vmem:[#allocation6 + $0x4b0] sm:$0xf0]  ;;  %v4085_v29 = vld [vmem:[#allocation6 + $0x5a4] sm:$0xf]  ;;  %v3624_v30 = vor.u32 %v4153_v22, %v3621_v23 }
  0x75   :  { %v3349_v31 = vld [vmem:[#allocation6 + $0x5b0] sm:$0xf0]  ;;  %v4117_v32 = vld [vmem:[#allocation6 + $0x6a4] sm:$0xf]  ;;  %v3224_v36 = vor.u32 %v4053_v27, %v3221_v28 }
  0x76   :  { %1789 = vmatpush.bf16.msra.mxu1 %v2760_v3  ;;  %1802 = vmatpush.bf16.msra.mxu2 %v2888_v5  ;;  %v3477_v33 = vld [vmem:[#allocation6 + $0x6b0] sm:$0xf0]  ;;  %v4149_v34 = vld [vmem:[#allocation6 + $0x7a4] sm:$0xf]  ;;  %v3352_v37 = vor.u32 %v4085_v29, %v3349_v31 }
  0x77   :  { %1815 = vmatpush.bf16.msra.mxu3 %v3016_v9  ;;  %v3605_v35 = vld [vmem:[#allocation6 + $0x7b0] sm:$0xf0]  ;;  %1777 = vmatmul.bf16.vlgmr.msra.gmra.mxu0 %v4429_v20  ;;  %v3480_v39 = vor.u32 %v4117_v32, %v3477_v33  ;;  %v4049_v40 = vld [vmem:[#allocation6 + $0x484] sm:$0xf] }
  0x78   :  { %1821 = vmatpush.bf16.msrb.mxu0 %v3256_v10  ;;  %v3205_v43 = vld [vmem:[#allocation6 + $0x490] sm:$0xf0]  ;;  %v4081_v45 = vld [vmem:[#allocation6 + $0x584] sm:$0xf]  ;;  %v3608_v46 = vor.u32 %v4149_v34, %v3605_v35 }
  0x79   :  { %1803 = vmatmul.bf16.vlgmr.msra.gmra.mxu2 %v4424_v4  ;;  %1790 = vmatmul.bf16.vlgmr.msra.gmra.mxu1 %v4432_v21  ;;  %v3333_v47 = vld [vmem:[#allocation6 + $0x590] sm:$0xf0]  ;;  %v4113_v48 = vld [vmem:[#allocation6 + $0x684] sm:$0xf]  ;;  %v3208_v52 = vor.u32 %v4049_v40, %v3205_v43  ;;  %v2747_v43 = vld [vmem:[#allocation6 + $0xe8] sm:$0xf] }
  0x7a   :  { %1834 = vmatpush.bf16.msrb.mxu1 %v3384_v11  ;;  %1847 = vmatpush.bf16.msrb.mxu2 %v3512_v12  ;;  %v3461_v49 = vld [vmem:[#allocation6 + $0x690] sm:$0xf0]  ;;  %v4145_v50 = vld [vmem:[#allocation6 + $0x784] sm:$0xf]  ;;  %v3336_v53 = vor.u32 %v4081_v45, %v3333_v47  ;;  %v3936_v45 = vld [vmem:[#allocation6 + $0xf4] sm:$0xf0] }
  0x7b   :  { %1860 = vmatpush.bf16.msrb.mxu3 %v3640_v16  ;;  %v3589_v51 = vld [vmem:[#allocation6 + $0x790] sm:$0xf0]  ;;  %v3464_v54 = vor.u32 %v4113_v48, %v3461_v49  ;;  %v4045_v55 = vld [vmem:[#allocation6 + $0x464] sm:$0xf]  ;;  %v3968_v48 = vld [vmem:[#allocation6 + $0x1f4] sm:$0xf0] }
  0x7c   :  { %1816 = vmatmul.bf16.vlgmr.msra.gmra.mxu3 %v4426_v6  ;;  %1822 = vmatpush.bf16.msrb.mxu0 %v3240_v24  ;;  %v3189_v56 = vld [vmem:[#allocation6 + $0x470] sm:$0xf0]  ;;  %v4077_v57 = vld [vmem:[#allocation6 + $0x564] sm:$0xf]  ;;  %v3592_v58 = vor.u32 %v4145_v50, %v3589_v51  ;;  %v3003_v49 = vld [vmem:[#allocation6 + $0x2e8] sm:$0xf] }
  0x7d   :  { %v3317_v59 = vld [vmem:[#allocation6 + $0x570] sm:$0xf0]  ;;  %v4109_v60 = vld [vmem:[#allocation6 + $0x664] sm:$0xf]  ;;  %v3192_v0 = vor.u32 %v4045_v55, %v3189_v56  ;;  %v4000_v50 = vld [vmem:[#allocation6 + $0x2f4] sm:$0xf0]  ;;  %v2748_v56 = vor.u32 %v3936_v45, %v2747_v43 }
  0x7e   :  { %1835 = vmatpush.bf16.msrb.mxu1 %v3368_v25  ;;  %1848 = vmatpush.bf16.msrb.mxu2 %v3496_v26  ;;  %v3445_v61 = vld [vmem:[#allocation6 + $0x670] sm:$0xf0]  ;;  %v4141_v62 = vld [vmem:[#allocation6 + $0x764] sm:$0xf]  ;;  %v3320_v1 = vor.u32 %v4077_v57, %v3317_v59  ;;  %v2731_v59 = vld [vmem:[#allocation6 + $0xc8] sm:$0xf] }
  0x7f   :  { %1861 = vmatpush.bf16.msrb.mxu3 %v3624_v30  ;;  %v3573_v63 = vld [vmem:[#allocation6 + $0x770] sm:$0xf0]  ;;  %v3448_v2 = vor.u32 %v4109_v60, %v3445_v61  ;;  %v4041_v3 = vld [vmem:[#allocation6 + $0x444] sm:$0xf]  ;;  %v3932_v60 = vld [vmem:[#allocation6 + $0xd4] sm:$0xf0] }
  0x80   :  { %1823 = vmatpush.bf16.msrb.mxu0 %v3224_v36  ;;  %v3173_v5 = vld [vmem:[#allocation6 + $0x450] sm:$0xf0]  ;;  %v4073_v7 = vld [vmem:[#allocation6 + $0x544] sm:$0xf]  ;;  %v3576_v8 = vor.u32 %v4141_v62, %v3573_v63  ;;  %v2859_v61 = vld [vmem:[#allocation6 + $0x1c8] sm:$0xf] }
  0x81   :  { %v3301_v9 = vld [vmem:[#allocation6 + $0x550] sm:$0xf0]  ;;  %v4105_v10 = vld [vmem:[#allocation6 + $0x644] sm:$0xf]  ;;  %v3176_v14 = vor.u32 %v4041_v3, %v3173_v5  ;;  %v3964_v63 = vld [vmem:[#allocation6 + $0x1d4] sm:$0xf0]  ;;  %v2732_v5 = vor.u32 %v3932_v60, %v2731_v59 }
  0x82   :  { %1836 = vmatpush.bf16.msrb.mxu1 %v3352_v37  ;;  %1849 = vmatpush.bf16.msrb.mxu2 %v3480_v39  ;;  %v3429_v11 = vld [vmem:[#allocation6 + $0x650] sm:$0xf0]  ;;  %v4137_v12 = vld [vmem:[#allocation6 + $0x744] sm:$0xf]  ;;  %v3304_v15 = vor.u32 %v4073_v7, %v3301_v9  ;;  %v4028_v3 = vld [vmem:[#allocation6 + $0x3d4] sm:$0xf0]  ;;  %v2860_v7 = vor.u32 %v3964_v63, %v2859_v61 }
  0x83   :  { %1862 = vmatpush.bf16.msrb.mxu3 %v3608_v46  ;;  %v3557_v13 = vld [vmem:[#allocation6 + $0x750] sm:$0xf0]  ;;  %v3432_v16 = vor.u32 %v4105_v10, %v3429_v11  ;;  %v4037_v17 = vld [vmem:[#allocation6 + $0x424] sm:$0xf]  ;;  %v2875_v46 = vld [vmem:[#allocation6 + $0x1e8] sm:$0xf] }
  0x84   :  { %1824 = vmatpush.bf16.msrb.mxu0 %v3208_v52  ;;  %v3157_v18 = vld [vmem:[#allocation6 + $0x430] sm:$0xf0]  ;;  %v4069_v19 = vld [vmem:[#allocation6 + $0x524] sm:$0xf]  ;;  %v3560_v22 = vor.u32 %v4137_v12, %v3557_v13  ;;  %v2876_v57 = vor.u32 %v3968_v48, %v2875_v46  ;;  %v2715_v9 = vld [vmem:[#allocation6 + $0xa8] sm:$0xf] }
  0x85   :  { %v3285_v23 = vld [vmem:[#allocation6 + $0x530] sm:$0xf0]  ;;  %v4101_v24 = vld [vmem:[#allocation6 + $0x624] sm:$0xf]  ;;  %v3160_v28 = vor.u32 %v4037_v17, %v3157_v18  ;;  %v3928_v10 = vld [vmem:[#allocation6 + $0xb4] sm:$0xf0] }
  0x86   :  { %1837 = vmatpush.bf16.msrb.mxu1 %v3336_v53  ;;  %1850 = vmatpush.bf16.msrb.mxu2 %v3464_v54  ;;  %v3413_v25 = vld [vmem:[#allocation6 + $0x630] sm:$0xf0]  ;;  %v4133_v26 = vld [vmem:[#allocation6 + $0x724] sm:$0xf]  ;;  %v3288_v31 = vor.u32 %v4069_v19, %v3285_v23  ;;  %v3131_v53 = vld [vmem:[#allocation6 + $0x3e8] sm:$0xf]  ;;  %v2716_v18 = vor.u32 %v3928_v10, %v2715_v9 }
  0x87   :  { %1863 = vmatpush.bf16.msrb.mxu3 %v3592_v58  ;;  %v3541_v27 = vld [vmem:[#allocation6 + $0x730] sm:$0xf0]  ;;  %v4033_v29 = vld [vmem:[#allocation6 + $0x404] sm:$0xf]  ;;  %v3416_v32 = vor.u32 %v4101_v24, %v3413_v25  ;;  %v4032_v54 = vld [vmem:[#allocation6 + $0x3f4] sm:$0xf0]  ;;  %v3004_v58 = vor.u32 %v4000_v50, %v3003_v49 }
  0x88   :  { %1825 = vmatpush.bf16.msrb.mxu0 %v3192_v0  ;;  %v3141_v30 = vld [vmem:[#allocation6 + $0x410] sm:$0xf0]  ;;  %v4065_v33 = vld [vmem:[#allocation6 + $0x504] sm:$0xf]  ;;  %v3544_v36 = vor.u32 %v4133_v26, %v3541_v27  ;;  %v3132_v62 = vor.u32 %v4032_v54, %v3131_v53  ;;  %v2987_v0 = vld [vmem:[#allocation6 + $0x2c8] sm:$0xf] }
  0x89   :  { %v3269_v34 = vld [vmem:[#allocation6 + $0x510] sm:$0xf0]  ;;  %v4097_v35 = vld [vmem:[#allocation6 + $0x604] sm:$0xf]  ;;  %v3144_v47 = vor.u32 %v4033_v29, %v3141_v30  ;;  %v2843_v11 = vld [vmem:[#allocation6 + $0x1a8] sm:$0xf] }
  0x8a   :  { %1838 = vmatpush.bf16.msrb.mxu1 %v3320_v1  ;;  %1851 = vmatpush.bf16.msrb.mxu2 %v3448_v2  ;;  %v3397_v37 = vld [vmem:[#allocation6 + $0x610] sm:$0xf0]  ;;  %v4129_v39 = vld [vmem:[#allocation6 + $0x704] sm:$0xf]  ;;  %v3272_v51 = vor.u32 %v4065_v33, %v3269_v34  ;;  %v3996_v1 = vld [vmem:[#allocation6 + $0x2d4] sm:$0xf0] }
  0x8b   :  { %1864 = vmatpush.bf16.msrb.mxu3 %v3576_v8  ;;  %v3525_v40 = vld [vmem:[#allocation6 + $0x710] sm:$0xf0]  ;;  %v3400_v52 = vor.u32 %v4097_v35, %v3397_v37  ;;  %v3115_v2 = vld [vmem:[#allocation6 + $0x3c8] sm:$0xf]  ;;  %v2988_v8 = vor.u32 %v3996_v1, %v2987_v0  ;;  %v3960_v13 = vld [vmem:[#allocation6 + $0x1b4] sm:$0xf0] }
  0x8c   :  { %1826 = vmatpush.bf16.msrb.mxu0 %v3176_v14  ;;  %v3528_v55 = vor.u32 %v4129_v39, %v3525_v40  ;;  %v3116_v12 = vor.u32 %v4028_v3, %v3115_v2  ;;  %v2971_v14 = vld [vmem:[#allocation6 + $0x2a8] sm:$0xf]  ;;  %v4024_v17 = vld [vmem:[#allocation6 + $0x3b4] sm:$0xf0]  ;;  %v2844_v19 = vor.u32 %v3960_v13, %v2843_v11 }
  0x8d   :  { %v2699_v23 = vld [vmem:[#allocation6 + $0x88] sm:$0xf]  ;;  %v3924_v24 = vld [vmem:[#allocation6 + $0x94] sm:$0xf0] }
  0x8e   :  { %1839 = vmatpush.bf16.msrb.mxu1 %v3304_v15  ;;  %1852 = vmatpush.bf16.msrb.mxu2 %v3432_v16  ;;  %v3992_v15 = vld [vmem:[#allocation6 + $0x2b4] sm:$0xf0]  ;;  %v3099_v16 = vld [vmem:[#allocation6 + $0x3a8] sm:$0xf] }
  0x8f   :  { %1865 = vmatpush.bf16.msrb.mxu3 %v3560_v22  ;;  %v2972_v22 = vor.u32 %v3992_v15, %v2971_v14  ;;  %v2827_v25 = vld [vmem:[#allocation6 + $0x188] sm:$0xf]  ;;  %v3100_v26 = vor.u32 %v4024_v17, %v3099_v16  ;;  %v3956_v27 = vld [vmem:[#allocation6 + $0x194] sm:$0xf0] }
  0x90   :  { %1827 = vmatpush.bf16.msrb.mxu0 %v3160_v28  ;;  %v2955_v28 = vld [vmem:[#allocation6 + $0x288] sm:$0xf]  ;;  %v3988_v29 = vld [vmem:[#allocation6 + $0x294] sm:$0xf0]  ;;  %v2828_v33 = vor.u32 %v3956_v27, %v2827_v25 }
  0x91   :  { %v3083_v30 = vld [vmem:[#allocation6 + $0x388] sm:$0xf]  ;;  %v2956_v34 = vor.u32 %v3988_v29, %v2955_v28  ;;  %v3952_v40 = vld [vmem:[#allocation6 + $0x174] sm:$0xf0] }
  0x92   :  { %1840 = vmatpush.bf16.msrb.mxu1 %v3288_v31  ;;  %1853 = vmatpush.bf16.msrb.mxu2 %v3416_v32  ;;  %v4020_v31 = vld [vmem:[#allocation6 + $0x394] sm:$0xf0]  ;;  %v2700_v32 = vor.u32 %v3924_v24, %v2699_v23  ;;  %v2683_v35 = vld [vmem:[#allocation6 + $0x68] sm:$0xf] }
  0x93   :  { %1866 = vmatpush.bf16.msrb.mxu3 %v3544_v36  ;;  %v3920_v36 = vld [vmem:[#allocation6 + $0x74] sm:$0xf0]  ;;  %v2811_v37 = vld [vmem:[#allocation6 + $0x168] sm:$0xf]  ;;  %v3084_v39 = vor.u32 %v4020_v31, %v3083_v30 }
  0x94   :  { %1828 = vmatpush.bf16.msrb.mxu0 %v3144_v47  ;;  %v2939_v43 = vld [vmem:[#allocation6 + $0x268] sm:$0xf]  ;;  %v3984_v45 = vld [vmem:[#allocation6 + $0x274] sm:$0xf0]  ;;  %v2684_v48 = vor.u32 %v3920_v36, %v2683_v35  ;;  %v2812_v49 = vor.u32 %v3952_v40, %v2811_v37 }
  0x95   :  { %v3067_v46 = vld [vmem:[#allocation6 + $0x368] sm:$0xf]  ;;  %v4016_v47 = vld [vmem:[#allocation6 + $0x374] sm:$0xf0]  ;;  %v2940_v50 = vor.u32 %v3984_v45, %v2939_v43 }
  0x96   :  { %1841 = vmatpush.bf16.msrb.mxu1 %v3272_v51  ;;  %1854 = vmatpush.bf16.msrb.mxu2 %v3400_v52  ;;  %v2667_v51 = vld [vmem:[#allocation6 + $0x48] sm:$0xf]  ;;  %v3916_v52 = vld [vmem:[#allocation6 + $0x54] sm:$0xf0]  ;;  %v3068_v54 = vor.u32 %v4016_v47, %v3067_v46 }
  0x97   :  { %1867 = vmatpush.bf16.msrb.mxu3 %v3528_v55  ;;  %1829 = vmatmul.bf16.vlgmr.msrb.gmra.mxu0 %v4438_v41  ;;  %v2795_v53 = vld [vmem:[#allocation6 + $0x148] sm:$0xf]  ;;  %v3948_v55 = vld [vmem:[#allocation6 + $0x154] sm:$0xf0]  ;;  %v2668_v60 = vor.u32 %v3916_v52, %v2667_v51 }
  0x98   :  { %1873 = vmatpush.bf16.msra.mxu0 %v2748_v56  ;;  %v2923_v56 = vld [vmem:[#allocation6 + $0x248] sm:$0xf]  ;;  %v4012_v59 = vld [vmem:[#allocation6 + $0x354] sm:$0xf0]  ;;  %v2796_v61 = vor.u32 %v3948_v55, %v2795_v53 }
  0x99   :  { %1855 = vmatmul.bf16.vlgmr.msrb.gmra.mxu2 %v4436_v38  ;;  %1842 = vmatmul.bf16.vlgmr.msrb.gmra.mxu1 %v4442_v44  ;;  %v2651_v63 = vld [vmem:[#allocation6 + $0x28] sm:$0xf]  ;;  %v3912_v0 = vld [vmem:[#allocation6 + $0x34] sm:$0xf0] }
  0x9a   :  { %1886 = vmatpush.bf16.msra.mxu1 %v2876_v57  ;;  %1899 = vmatpush.bf16.msra.mxu2 %v3004_v58  ;;  %v3980_v57 = vld [vmem:[#allocation6 + $0x254] sm:$0xf0]  ;;  %v3051_v58 = vld [vmem:[#allocation6 + $0x348] sm:$0xf]  ;;  %v2652_v10 = vor.u32 %v3912_v0, %v2651_v63 }
  0x9b   :  { %1912 = vmatpush.bf16.msra.mxu3 %v3132_v62  ;;  %v2924_v62 = vor.u32 %v3980_v57, %v2923_v56  ;;  %v2779_v1 = vld [vmem:[#allocation6 + $0x128] sm:$0xf]  ;;  %v3052_v2 = vor.u32 %v4012_v59, %v3051_v58  ;;  %v3944_v3 = vld [vmem:[#allocation6 + $0x134] sm:$0xf0] }
  0x9c   :  { %1868 = vmatmul.bf16.vlgmr.msrb.gmra.mxu3 %v4440_v42  ;;  %1874 = vmatpush.bf16.msra.mxu0 %v2732_v5  ;;  %v2907_v5 = vld [vmem:[#allocation6 + $0x228] sm:$0xf]  ;;  %v4008_v9 = vld [vmem:[#allocation6 + $0x334] sm:$0xf0]  ;;  %v2780_v13 = vor.u32 %v3944_v3, %v2779_v1 }
  0x9d   :  { %v2635_v11 = vld [vmem:[#allocation6 + $0x8] sm:$0xf]  ;;  %v3940_v16 = vld [vmem:[#allocation6 + $0x114] sm:$0xf0] }
  0x9e   :  { %1887 = vmatpush.bf16.msra.mxu1 %v2860_v7  ;;  %1900 = vmatpush.bf16.msra.mxu2 %v2988_v8  ;;  %v3976_v7 = vld [vmem:[#allocation6 + $0x234] sm:$0xf0]  ;;  %v3035_v8 = vld [vmem:[#allocation6 + $0x328] sm:$0xf] }
  0x9f   :  { %1913 = vmatpush.bf16.msra.mxu3 %v3116_v12  ;;  %v3908_v12 = vld [vmem:[#allocation6 + $0x14] sm:$0xf0]  ;;  %v2908_v14 = vor.u32 %v3976_v7, %v2907_v5  ;;  %v2763_v15 = vld [vmem:[#allocation6 + $0x108] sm:$0xf] }
  0xa0   :  { %1875 = vmatpush.bf16.msra.mxu0 %v2716_v18  ;;  %v2891_v17 = vld [vmem:[#allocation6 + $0x208] sm:$0xf]  ;;  %v3036_v18 = vor.u32 %v4008_v9, %v3035_v8  ;;  %v4004_v23 = vld [vmem:[#allocation6 + $0x314] sm:$0xf0]  ;;  %v2636_v27 = vor.u32 %v3908_v12, %v2635_v11  ;;  %v2764_v31 = vor.u32 %v3940_v16, %v2763_v15 }
  0xa1   :  { %v3259_v24 = vld [vmem:[#allocation6 + $0x4e8] sm:$0xf]  ;;  %v4064_v25 = vld [vmem:[#allocation6 + $0x4f4] sm:$0xf0] }
  0xa2   :  { %1888 = vmatpush.bf16.msra.mxu1 %v2844_v19  ;;  %1901 = vmatpush.bf16.msra.mxu2 %v2972_v22  ;;  %v3972_v19 = vld [vmem:[#allocation6 + $0x214] sm:$0xf0]  ;;  %v3019_v22 = vld [vmem:[#allocation6 + $0x308] sm:$0xf]  ;;  %v3260_v36 = vor.u32 %v4064_v25, %v3259_v24 }
  0xa3   :  { %1914 = vmatpush.bf16.msra.mxu3 %v3100_v26  ;;  %v3387_v26 = vld [vmem:[#allocation6 + $0x5e8] sm:$0xf]  ;;  %v4096_v28 = vld [vmem:[#allocation6 + $0x5f4] sm:$0xf0]  ;;  %v3020_v35 = vor.u32 %v4004_v23, %v3019_v22  ;;  %v4460_v22 = vld [vmem:[#allocation8] sm:$0xf] }
  0xa4   :  { %1876 = vmatpush.bf16.msra.mxu0 %v2700_v32  ;;  %v3515_v29 = vld [vmem:[#allocation6 + $0x6e8] sm:$0xf]  ;;  %v4128_v30 = vld [vmem:[#allocation6 + $0x6f4] sm:$0xf0]  ;;  %v2892_v32 = vor.u32 %v3972_v19, %v2891_v17  ;;  %v3388_v37 = vor.u32 %v4096_v28, %v3387_v26 }
  0xa5   :  { %v3243_v40 = vld [vmem:[#allocation6 + $0x4c8] sm:$0xf]  ;;  %v4060_v43 = vld [vmem:[#allocation6 + $0x4d4] sm:$0xf0] }
  0xa6   :  { %1889 = vmatpush.bf16.msra.mxu1 %v2828_v33  ;;  %1902 = vmatpush.bf16.msra.mxu2 %v2956_v34  ;;  %v3643_v33 = vld [vmem:[#allocation6 + $0x7e8] sm:$0xf]  ;;  %v4160_v34 = vld [vmem:[#allocation6 + $0x7f4] sm:$0xf0]  ;;  %v3244_v52 = vor.u32 %v4060_v43, %v3243_v40 }
  0xa7   :  { %1915 = vmatpush.bf16.msra.mxu3 %v3084_v39  ;;  %v3516_v39 = vor.u32 %v4128_v30, %v3515_v29  ;;  %v3371_v45 = vld [vmem:[#allocation6 + $0x5c8] sm:$0xf]  ;;  %v3644_v46 = vor.u32 %v4160_v34, %v3643_v33  ;;  %v4092_v47 = vld [vmem:[#allocation6 + $0x5d4] sm:$0xf0]  ;;  %v349_v30 = vperm.slane %v4460_v22, 0 }
  0xa8   :  { %1877 = vmatpush.bf16.msra.mxu0 %v2684_v48  ;;  %v3499_v48 = vld [vmem:[#allocation6 + $0x6c8] sm:$0xf]  ;;  %v4156_v51 = vld [vmem:[#allocation6 + $0x7d4] sm:$0xf0]  ;;  %v3372_v53 = vor.u32 %v4092_v47, %v3371_v45 }
  0xa9   :  { %v3227_v55 = vld [vmem:[#allocation6 + $0x4a8] sm:$0xf]  ;;  %v4056_v56 = vld [vmem:[#allocation6 + $0x4b4] sm:$0xf0] }
  0xaa   :  { %1890 = vmatpush.bf16.msra.mxu1 %v2812_v49  ;;  %1903 = vmatpush.bf16.msra.mxu2 %v2940_v50  ;;  %v4124_v49 = vld [vmem:[#allocation6 + $0x6d4] sm:$0xf0]  ;;  %v3627_v50 = vld [vmem:[#allocation6 + $0x7c8] sm:$0xf]  ;;  %v3228_v0 = vor.u32 %v4056_v56, %v3227_v55 }
  0xab   :  { %1916 = vmatpush.bf16.msra.mxu3 %v3068_v54  ;;  %v3500_v54 = vor.u32 %v4124_v49, %v3499_v48  ;;  %v3355_v57 = vld [vmem:[#allocation6 + $0x5a8] sm:$0xf]  ;;  %v3628_v58 = vor.u32 %v4156_v51, %v3627_v50  ;;  %v4088_v59 = vld [vmem:[#allocation6 + $0x5b4] sm:$0xf0] }
  0xac   :  { %1878 = vmatpush.bf16.msra.mxu0 %v2668_v60  ;;  %v3483_v60 = vld [vmem:[#allocation6 + $0x6a8] sm:$0xf]  ;;  %v4152_v63 = vld [vmem:[#allocation6 + $0x7b4] sm:$0xf0]  ;;  %v3356_v1 = vor.u32 %v4088_v59, %v3355_v57 }
  0xad   :  { %v3211_v3 = vld [vmem:[#allocation6 + $0x488] sm:$0xf]  ;;  %v4052_v5 = vld [vmem:[#allocation6 + $0x494] sm:$0xf0] }
  0xae   :  { %1891 = vmatpush.bf16.msra.mxu1 %v2796_v61  ;;  %1904 = vmatpush.bf16.msra.mxu2 %v2924_v62  ;;  %v4120_v61 = vld [vmem:[#allocation6 + $0x6b4] sm:$0xf0]  ;;  %v3611_v62 = vld [vmem:[#allocation6 + $0x7a8] sm:$0xf] }
  0xaf   :  { %1917 = vmatpush.bf16.msra.mxu3 %v3052_v2  ;;  %v3484_v2 = vor.u32 %v4120_v61, %v3483_v60  ;;  %v3339_v7 = vld [vmem:[#allocation6 + $0x588] sm:$0xf]  ;;  %v3612_v8 = vor.u32 %v4152_v63, %v3611_v62  ;;  %v4084_v9 = vld [vmem:[#allocation6 + $0x594] sm:$0xf0] }
  0xb0   :  { %1879 = vmatpush.bf16.msra.mxu0 %v2652_v10  ;;  %v3467_v10 = vld [vmem:[#allocation6 + $0x688] sm:$0xf]  ;;  %v4116_v11 = vld [vmem:[#allocation6 + $0x694] sm:$0xf0]  ;;  %v3340_v16 = vor.u32 %v4084_v9, %v3339_v7 }
  0xb1   :  { %v3595_v12 = vld [vmem:[#allocation6 + $0x788] sm:$0xf]  ;;  %v3468_v17 = vor.u32 %v4116_v11, %v3467_v10  ;;  %v4080_v24 = vld [vmem:[#allocation6 + $0x574] sm:$0xf0] }
  0xb2   :  { %1892 = vmatpush.bf16.msra.mxu1 %v2780_v13  ;;  %1905 = vmatpush.bf16.msra.mxu2 %v2908_v14  ;;  %v4148_v13 = vld [vmem:[#allocation6 + $0x794] sm:$0xf0]  ;;  %v3212_v14 = vor.u32 %v4052_v5, %v3211_v3  ;;  %v3195_v15 = vld [vmem:[#allocation6 + $0x468] sm:$0xf] }
  0xb3   :  { %1918 = vmatpush.bf16.msra.mxu3 %v3036_v18  ;;  %v4048_v18 = vld [vmem:[#allocation6 + $0x474] sm:$0xf0]  ;;  %v3323_v19 = vld [vmem:[#allocation6 + $0x568] sm:$0xf]  ;;  %v3596_v23 = vor.u32 %v4148_v13, %v3595_v12 }
  0xb4   :  { %1880 = vmatpush.bf16.msra.mxu0 %v2636_v27  ;;  %v3451_v25 = vld [vmem:[#allocation6 + $0x668] sm:$0xf]  ;;  %v4112_v26 = vld [vmem:[#allocation6 + $0x674] sm:$0xf0]  ;;  %v3196_v29 = vor.u32 %v4048_v18, %v3195_v15  ;;  %v3966_v18 = vld [vmem:[#allocation6 + $0x1ec] sm:$0xf] }
  0xb5   :  { %v3579_v27 = vld [vmem:[#allocation6 + $0x768] sm:$0xf]  ;;  %v4144_v28 = vld [vmem:[#allocation6 + $0x774] sm:$0xf0] }
  0xb6   :  { %1893 = vmatpush.bf16.msra.mxu1 %v2764_v31  ;;  %1906 = vmatpush.bf16.msra.mxu2 %v2892_v32  ;;  %v3324_v31 = vor.u32 %v4080_v24, %v3323_v19  ;;  %v3452_v32 = vor.u32 %v4112_v26, %v3451_v25  ;;  %v3179_v33 = vld [vmem:[#allocation6 + $0x448] sm:$0xf]  ;;  %v4044_v34 = vld [vmem:[#allocation6 + $0x454] sm:$0xf0]  ;;  %v2877_v24 = vld [vmem:[#allocation6 + $0x1f8] sm:$0xf0] }
  0xb7   :  { %1919 = vmatpush.bf16.msra.mxu3 %v3020_v35  ;;  %1881 = vmatmul.bf16.vlgmr.msra.gmra.mxu0 %v4429_v20  ;;  %v3307_v35 = vld [vmem:[#allocation6 + $0x548] sm:$0xf]  ;;  %v4108_v40 = vld [vmem:[#allocation6 + $0x654] sm:$0xf0]  ;;  %v3180_v47 = vor.u32 %v4044_v34, %v3179_v33  ;;  %v3998_v25 = vld [vmem:[#allocation6 + $0x2ec] sm:$0xf] }
  0xb8   :  { %1925 = vmatpush.bf16.msrb.mxu0 %v3260_v36  ;;  %v3580_v36 = vor.u32 %v4144_v28, %v3579_v27  ;;  %v3563_v43 = vld [vmem:[#allocation6 + $0x748] sm:$0xf]  ;;  %v4140_v45 = vld [vmem:[#allocation6 + $0x754] sm:$0xf0]  ;;  %v3005_v26 = vld [vmem:[#allocation6 + $0x2f8] sm:$0xf0] }
  0xb9   :  { %1907 = vmatmul.bf16.vlgmr.msra.gmra.mxu2 %v4424_v4  ;;  %1894 = vmatmul.bf16.vlgmr.msra.gmra.mxu1 %v4432_v21  ;;  %v3564_v56 = vor.u32 %v4140_v45, %v3563_v43  ;;  %v4072_v57 = vld [vmem:[#allocation6 + $0x534] sm:$0xf0]  ;;  %v3547_v62 = vld [vmem:[#allocation6 + $0x728] sm:$0xf]  ;;  %v3962_v43 = vld [vmem:[#allocation6 + $0x1cc] sm:$0xf] }
  0xba   :  { %1938 = vmatpush.bf16.msrb.mxu1 %v3388_v37  ;;  %1951 = vmatpush.bf16.msrb.mxu2 %v3516_v39  ;;  %v4076_v37 = vld [vmem:[#allocation6 + $0x554] sm:$0xf0]  ;;  %v3435_v39 = vld [vmem:[#allocation6 + $0x648] sm:$0xf] }
  0xbb   :  { %1964 = vmatpush.bf16.msrb.mxu3 %v3644_v46  ;;  %v3308_v50 = vor.u32 %v4076_v37, %v3307_v35  ;;  %v3436_v51 = vor.u32 %v4108_v40, %v3435_v39  ;;  %v1700_v55 = vpop.f32.mrf.mxu2  ;;  %v4104_v59 = vld [vmem:[#allocation6 + $0x634] sm:$0xf0]  ;;  %v3403_v10 = vld [vmem:[#allocation6 + $0x608] sm:$0xf]  ;;  %v3008_v37 = vor.u32 %v3998_v25, %v3005_v26  ;;  %v3930_v39 = vld [vmem:[#allocation6 + $0xcc] sm:$0xf] }
  0xbc   :  { %1920 = vmatmul.bf16.vlgmr.msra.gmra.mxu3 %v4426_v6  ;;  %1926 = vmatpush.bf16.msrb.mxu0 %v3244_v52  ;;  %v3163_v52 = vld [vmem:[#allocation6 + $0x428] sm:$0xf]  ;;  %v1713_v61 = vpop.f32.mrf.mxu3  ;;  %v4136_v63 = vld [vmem:[#allocation6 + $0x734] sm:$0xf0]  ;;  %v2733_v40 = vld [vmem:[#allocation6 + $0xd8] sm:$0xf0] }
  0xbd   :  { %v4068_v9 = vld [vmem:[#allocation6 + $0x514] sm:$0xf0]  ;;  %v3548_v11 = vor.u32 %v4136_v63, %v3547_v62  ;;  %v3531_v13 = vld [vmem:[#allocation6 + $0x708] sm:$0xf]  ;;  %v3101_v62 = vld [vmem:[#allocation6 + $0x3b8] sm:$0xf0] }
  0xbe   :  { %1939 = vmatpush.bf16.msrb.mxu1 %v3372_v53  ;;  %1952 = vmatpush.bf16.msrb.mxu2 %v3500_v54  ;;  %v4040_v53 = vld [vmem:[#allocation6 + $0x434] sm:$0xf0]  ;;  %v3291_v54 = vld [vmem:[#allocation6 + $0x528] sm:$0xf] }
  0xbf   :  { %1965 = vmatpush.bf16.msrb.mxu3 %v3628_v58  ;;  %v3419_v58 = vld [vmem:[#allocation6 + $0x628] sm:$0xf]  ;;  %v3292_v5 = vor.u32 %v4072_v57, %v3291_v54  ;;  %v4100_v12 = vld [vmem:[#allocation6 + $0x614] sm:$0xf0]  ;;  %v3926_v54 = vld [vmem:[#allocation6 + $0xac] sm:$0xf] }
  0xc0   :  { %1927 = vmatpush.bf16.msrb.mxu0 %v3228_v0  ;;  %v3164_v0 = vor.u32 %v4040_v53, %v3163_v52  ;;  %v3420_v7 = vor.u32 %v4104_v59, %v3419_v58  ;;  %v2845_v58 = vld [vmem:[#allocation6 + $0x1b8] sm:$0xf0]  ;;  %v3990_v59 = vld [vmem:[#allocation6 + $0x2ac] sm:$0xf] }
  0xc2   :  { %1940 = vmatpush.bf16.msrb.mxu1 %v3356_v1  ;;  %1953 = vmatpush.bf16.msrb.mxu2 %v3484_v2  ;;  %v1674_v46 = vpop.f32.mrf.mxu0  ;;  %v1687_v49 = vpop.f32.mrf.mxu1  ;;  %v3147_v1 = vld [vmem:[#allocation6 + $0x408] sm:$0xf]  ;;  %v4036_v2 = vld [vmem:[#allocation6 + $0x414] sm:$0xf0] }
  0xc3   :  { %1966 = vmatpush.bf16.msrb.mxu3 %v3612_v8  ;;  %v1675_v48 = vadd.f32 %v1674_v46, %v349_v30  ;;  %v3275_v8 = vld [vmem:[#allocation6 + $0x508] sm:$0xf]  ;;  %v4030_v30 = vld [vmem:[#allocation6 + $0x3ec] sm:$0xf]  ;;  %v2861_v46 = vld [vmem:[#allocation6 + $0x1d8] sm:$0xf0] }
  0xc4   :  { %1928 = vmatpush.bf16.msrb.mxu0 %v3212_v14  ;;  %v4132_v14 = vld [vmem:[#allocation6 + $0x714] sm:$0xf0]  ;;  %v3276_v28 = vor.u32 %v4068_v9, %v3275_v8  ;;  %v1715_v35 = vpop.f32.mrf.mxu3  ;;  %v2864_v52 = vor.u32 %v3962_v43, %v2861_v46  ;;  %v2829_v8 = vld [vmem:[#allocation6 + $0x198] sm:$0xf0]  ;;  %v3986_v9 = vld [vmem:[#allocation6 + $0x28c] sm:$0xf] }
  0xc5   :  { %v1688_v60 = vadd.f32 %v1687_v49, %v1675_v48  ;;  %v3532_v33 = vor.u32 %v4132_v14, %v3531_v13  ;;  %v2989_v48 = vld [vmem:[#allocation6 + $0x2d8] sm:$0xf0]  ;;  %v4026_v49 = vld [vmem:[#allocation6 + $0x3cc] sm:$0xf] }
  0xc6   :  { %1941 = vmatpush.bf16.msrb.mxu1 %v3340_v16  ;;  %1954 = vmatpush.bf16.msrb.mxu2 %v3468_v17  ;;  %v3934_v16 = vld [vmem:[#allocation6 + $0xec] sm:$0xf]  ;;  %v2749_v17 = vld [vmem:[#allocation6 + $0xf8] sm:$0xf0] }
  0xc7   :  { %1967 = vmatpush.bf16.msrb.mxu3 %v3596_v23  ;;  %v1701_v3 = vadd.f32 %v1700_v55, %v1688_v60  ;;  %v3148_v23 = vor.u32 %v4036_v2, %v3147_v1  ;;  %v2752_v34 = vor.u32 %v3934_v16, %v2749_v17  ;;  %v2717_v55 = vld [vmem:[#allocation6 + $0xb8] sm:$0xf0]  ;;  %v3922_v2 = vld [vmem:[#allocation6 + $0x8c] sm:$0xf] }
  0xc8   :  { %1929 = vmatpush.bf16.msrb.mxu0 %v3196_v29  ;;  %v3404_v29 = vor.u32 %v4100_v12, %v3403_v10  ;;  %v2973_v60 = vld [vmem:[#allocation6 + $0x2b8] sm:$0xf0]  ;;  %v2720_v63 = vor.u32 %v3926_v54, %v2717_v55 }
  0xc9   :  { %v4463_v15 = vadd.f32 %v1713_v61, %v1701_v3  ;;  %v4022_v61 = vld [vmem:[#allocation6 + $0x3ac] sm:$0xf]  ;;  %v2976_v1 = vor.u32 %v3990_v59, %v2973_v60  ;;  %v2701_v3 = vld [vmem:[#allocation6 + $0x98] sm:$0xf0] }
  0xca   :  { %1942 = vmatpush.bf16.msrb.mxu1 %v3324_v31  ;;  %1955 = vmatpush.bf16.msrb.mxu2 %v3452_v32  ;;  %v1676_v19 = vpop.f32.mrf.mxu0  ;;  %v1689_v27 = vpop.f32.mrf.mxu1  ;;  %v3133_v31 = vld [vmem:[#allocation6 + $0x3f8] sm:$0xf0]  ;;  %v2704_v13 = vor.u32 %v3922_v2, %v2701_v3  ;;  %v3906_v3 = vld [vmem:[#allocation6 + $0xc] sm:$0xf] }
  0xcb   :  { %1968 = vmatpush.bf16.msrb.mxu3 %v3580_v36  ;;  %v1702_v32 = vpop.f32.mrf.mxu2  ;;  %v2880_v36 = vor.u32 %v3966_v18, %v2877_v24  ;;  %v3136_v45 = vor.u32 %v4030_v30, %v3133_v31  ;;  %v2957_v10 = vld [vmem:[#allocation6 + $0x298] sm:$0xf0]  ;;  %v3918_v18 = vld [vmem:[#allocation6 + $0x6c] sm:$0xf] }
  0xcc   :  { %1930 = vmatpush.bf16.msrb.mxu0 %v3180_v47  ;;  %v3994_v47 = vld [vmem:[#allocation6 + $0x2cc] sm:$0xf]  ;;  %v3085_v12 = vld [vmem:[#allocation6 + $0x398] sm:$0xf0]  ;;  %v2960_v17 = vor.u32 %v3986_v9, %v2957_v10 }
  0xcd   :  { %v2992_v53 = vor.u32 %v3994_v47, %v2989_v48  ;;  %v2685_v19 = vld [vmem:[#allocation6 + $0x78] sm:$0xf0]  ;;  %v4014_v30 = vld [vmem:[#allocation6 + $0x36c] sm:$0xf] }
  0xce   :  { %1943 = vmatpush.bf16.msrb.mxu1 %v3308_v50  ;;  %1956 = vmatpush.bf16.msrb.mxu2 %v3436_v51  ;;  %v3117_v50 = vld [vmem:[#allocation6 + $0x3d8] sm:$0xf0]  ;;  %v2736_v51 = vor.u32 %v3930_v39, %v2733_v40  ;;  %v3946_v39 = vld [vmem:[#allocation6 + $0x14c] sm:$0xf] }
  0xcf   :  { %1969 = vmatpush.bf16.msrb.mxu3 %v3564_v56  ;;  %v3958_v56 = vld [vmem:[#allocation6 + $0x1ac] sm:$0xf]  ;;  %v3120_v57 = vor.u32 %v4026_v49, %v3117_v50  ;;  %v2813_v27 = vld [vmem:[#allocation6 + $0x178] sm:$0xf0] }
  0xd0   :  { %1931 = vmatpush.bf16.msrb.mxu0 %v3164_v0  ;;  %v2848_v0 = vor.u32 %v3958_v56, %v2845_v58  ;;  %v3069_v31 = vld [vmem:[#allocation6 + $0x378] sm:$0xf0]  ;;  %v4010_v49 = vld [vmem:[#allocation6 + $0x34c] sm:$0xf] }
  0xd1   :  { %v2797_v43 = vld [vmem:[#allocation6 + $0x158] sm:$0xf0]  ;;  %v3910_v56 = vld [vmem:[#allocation6 + $0x2c] sm:$0xf] }
  0xd2   :  { %1944 = vmatpush.bf16.msrb.mxu1 %v3292_v5  ;;  %1957 = vmatpush.bf16.msrb.mxu2 %v3420_v7  ;;  %v3954_v5 = vld [vmem:[#allocation6 + $0x18c] sm:$0xf]  ;;  %v3104_v7 = vor.u32 %v4022_v61, %v3101_v62  ;;  %v2925_v46 = vld [vmem:[#allocation6 + $0x258] sm:$0xf0]  ;;  %v2800_v54 = vor.u32 %v3946_v39, %v2797_v43 }
  0xd3   :  { %1970 = vmatpush.bf16.msrb.mxu3 %v3548_v11  ;;  %v4018_v11 = vld [vmem:[#allocation6 + $0x38c] sm:$0xf]  ;;  %v2832_v16 = vor.u32 %v3954_v5, %v2829_v8  ;;  %v3053_v50 = vld [vmem:[#allocation6 + $0x358] sm:$0xf0] }
  0xd4   :  { %1932 = vmatpush.bf16.msrb.mxu0 %v3148_v23  ;;  %v3950_v23 = vld [vmem:[#allocation6 + $0x16c] sm:$0xf]  ;;  %v3088_v26 = vor.u32 %v4018_v11, %v3085_v12  ;;  %v3056_v60 = vor.u32 %v4010_v49, %v3053_v50  ;;  %v2781_v61 = vld [vmem:[#allocation6 + $0x138] sm:$0xf0] }
  0xd5   :  { %v3942_v58 = vld [vmem:[#allocation6 + $0x12c] sm:$0xf]  ;;  %v2637_v5 = vld [vmem:[#allocation6 + $0x18] sm:$0xf0] }
  0xd6   :  { %1945 = vmatpush.bf16.msrb.mxu1 %v3276_v28  ;;  %1958 = vmatpush.bf16.msrb.mxu2 %v3404_v29  ;;  %v1726_v14 = vpop.f32.mrf.mxu0  ;;  %v3982_v28 = vld [vmem:[#allocation6 + $0x26c] sm:$0xf]  ;;  %v2941_v29 = vld [vmem:[#allocation6 + $0x278] sm:$0xf0] }
  0xd7   :  { %1971 = vmatpush.bf16.msrb.mxu3 %v3532_v33  ;;  %1933 = vmatmul.bf16.vlgmr.msrb.gmra.mxu0 %v4438_v41  ;;  %v1727_v24 = vadd.f32 %v1726_v14, %v4463_v15  ;;  %v2688_v33 = vor.u32 %v3918_v18, %v2685_v19  ;;  %v2944_v35 = vor.u32 %v3982_v28, %v2941_v29  ;;  %v3974_v62 = vld [vmem:[#allocation6 + $0x22c] sm:$0xf]  ;;  %v2765_v10 = vld [vmem:[#allocation6 + $0x118] sm:$0xf0] }
  0xd8   :  { %1977 = vmatpush.bf16.msra.mxu0 %v2752_v34  ;;  %v1739_v25 = vpop.f32.mrf.mxu1  ;;  %v2816_v34 = vor.u32 %v3950_v23, %v2813_v27  ;;  %v3072_v15 = vor.u32 %v4014_v30, %v3069_v31  ;;  %v3938_v9 = vld [vmem:[#allocation6 + $0x10c] sm:$0xf]  ;;  %v2893_v14 = vld [vmem:[#allocation6 + $0x218] sm:$0xf0] }
  0xd9   :  { %1959 = vmatmul.bf16.vlgmr.msrb.gmra.mxu2 %v4436_v38  ;;  %1946 = vmatmul.bf16.vlgmr.msrb.gmra.mxu1 %v4442_v44  ;;  %v1740_v32 = vadd.f32 %v1739_v25, %v1727_v24  ;;  %v3970_v11 = vld [vmem:[#allocation6 + $0x20c] sm:$0xf]  ;;  %v3261_v23 = vld [vmem:[#allocation6 + $0x4f8] sm:$0xf0]  ;;  %v2640_v25 = vor.u32 %v3906_v3, %v2637_v5  ;;  %v2768_v29 = vor.u32 %v3938_v9, %v2765_v10 }
  0xda   :  { %1990 = vmatpush.bf16.msra.mxu1 %v2880_v36  ;;  %2003 = vmatpush.bf16.msra.mxu2 %v3008_v37  ;;  %v3914_v36 = vld [vmem:[#allocation6 + $0x4c] sm:$0xf]  ;;  %v2669_v37 = vld [vmem:[#allocation6 + $0x58] sm:$0xf0]  ;;  %v2896_v30 = vor.u32 %v3970_v11, %v2893_v14 }
  0xdb   :  { %2016 = vmatpush.bf16.msra.mxu3 %v3136_v45  ;;  %v3978_v45 = vld [vmem:[#allocation6 + $0x24c] sm:$0xf]  ;;  %v3517_v28 = vld [vmem:[#allocation6 + $0x6f8] sm:$0xf0] }
  0xdc   :  { %1972 = vmatmul.bf16.vlgmr.msrb.gmra.mxu3 %v4440_v42  ;;  %1978 = vmatpush.bf16.msra.mxu0 %v2736_v51  ;;  %v1752_v40 = vpop.f32.mrf.mxu2  ;;  %v2672_v51 = vor.u32 %v3914_v36, %v2669_v37  ;;  %v2928_v55 = vor.u32 %v3978_v45, %v2925_v46  ;;  %v4062_v19 = vld [vmem:[#allocation6 + $0x4ec] sm:$0xf]  ;;  %v3245_v39 = vld [vmem:[#allocation6 + $0x4d8] sm:$0xf0] }
  0xdd   :  { %v1753_v47 = vadd.f32 %v1752_v40, %v1740_v32  ;;  %v4094_v24 = vld [vmem:[#allocation6 + $0x5ec] sm:$0xf]  ;;  %v3645_v32 = vld [vmem:[#allocation6 + $0x7f8] sm:$0xf0] }
  0xde   :  { %1991 = vmatpush.bf16.msra.mxu1 %v2864_v52  ;;  %2004 = vmatpush.bf16.msra.mxu2 %v2992_v53  ;;  %v1728_v53 = vpop.f32.mrf.mxu0  ;;  %v4126_v27 = vld [vmem:[#allocation6 + $0x6ec] sm:$0xf]  ;;  %v3373_v43 = vld [vmem:[#allocation6 + $0x5d8] sm:$0xf0] }
  0xdf   :  { %2017 = vmatpush.bf16.msra.mxu3 %v3120_v57  ;;  %v1765_v48 = vpop.f32.mrf.mxu3  ;;  %v2653_v57 = vld [vmem:[#allocation6 + $0x38] sm:$0xf0]  ;;  %v4158_v31 = vld [vmem:[#allocation6 + $0x7ec] sm:$0xf]  ;;  %v3520_v36 = vor.u32 %v4126_v27, %v3517_v28 }
  0xe0   :  { %1979 = vmatpush.bf16.msra.mxu0 %v2720_v63  ;;  %v4470_v52 = vadd.f32 %v1765_v48, %v1753_v47  ;;  %v1741_v59 = vpop.f32.mrf.mxu1  ;;  %v2909_v63 = vld [vmem:[#allocation6 + $0x238] sm:$0xf0]  ;;  %v2656_v2 = vor.u32 %v3910_v56, %v2653_v57  ;;  %v4058_v37 = vld [vmem:[#allocation6 + $0x4cc] sm:$0xf] }
  0xe1   :  { %v2912_v8 = vor.u32 %v3974_v62, %v2909_v63  ;;  %v4090_v40 = vld [vmem:[#allocation6 + $0x5cc] sm:$0xf]  ;;  %v3501_v46 = vld [vmem:[#allocation6 + $0x6d8] sm:$0xf0]  ;;  %v3248_v49 = vor.u32 %v4058_v37, %v3245_v39 }
  0xe2   :  { %1992 = vmatpush.bf16.msra.mxu1 %v2848_v0  ;;  %2005 = vmatpush.bf16.msra.mxu2 %v2976_v1  ;;  %v4006_v0 = vld [vmem:[#allocation6 + $0x32c] sm:$0xf]  ;;  %v3037_v1 = vld [vmem:[#allocation6 + $0x338] sm:$0xf0]  ;;  %v3376_v50 = vor.u32 %v4090_v40, %v3373_v43 }
  0xe3   :  { %2018 = vmatpush.bf16.msra.mxu3 %v3104_v7  ;;  %v2784_v7 = vor.u32 %v3942_v58, %v2781_v61  ;;  %v4122_v45 = vld [vmem:[#allocation6 + $0x6cc] sm:$0xf]  ;;  %v3629_v48 = vld [vmem:[#allocation6 + $0x7d8] sm:$0xf0] }
  0xe4   :  { %1980 = vmatpush.bf16.msra.mxu0 %v2704_v13  ;;  %v1754_v12 = vpop.f32.mrf.mxu2  ;;  %v3040_v13 = vor.u32 %v4006_v0, %v3037_v1  ;;  %v4154_v47 = vld [vmem:[#allocation6 + $0x7cc] sm:$0xf]  ;;  %v3357_v57 = vld [vmem:[#allocation6 + $0x5b8] sm:$0xf0] }
  0xe5   :  { %v4054_v53 = vld [vmem:[#allocation6 + $0x4ac] sm:$0xf]  ;;  %v3632_v56 = vor.u32 %v4154_v47, %v3629_v48  ;;  %v3485_v59 = vld [vmem:[#allocation6 + $0x6b8] sm:$0xf0] }
  0xe6   :  { %1993 = vmatpush.bf16.msra.mxu1 %v2832_v16  ;;  %2006 = vmatpush.bf16.msra.mxu2 %v2960_v17  ;;  %v4002_v16 = vld [vmem:[#allocation6 + $0x30c] sm:$0xf]  ;;  %v3021_v17 = vld [vmem:[#allocation6 + $0x318] sm:$0xf0] }
  0xe7   :  { %2019 = vmatpush.bf16.msra.mxu3 %v3088_v26  ;;  %v1767_v18 = vpop.f32.mrf.mxu3  ;;  %v3389_v26 = vld [vmem:[#allocation6 + $0x5f8] sm:$0xf0]  ;;  %v4118_v58 = vld [vmem:[#allocation6 + $0x6ac] sm:$0xf] }
  0xe8   :  { %1981 = vmatpush.bf16.msra.mxu0 %v2688_v33  ;;  %v3024_v33 = vor.u32 %v4002_v16, %v3021_v17  ;;  %v3613_v61 = vld [vmem:[#allocation6 + $0x7b8] sm:$0xf0]  ;;  %v3488_v0 = vor.u32 %v4118_v58, %v3485_v59  ;;  %v4050_v1 = vld [vmem:[#allocation6 + $0x48c] sm:$0xf]  ;;  %v350_v58 = vperm.slane %v4460_v22, 1 }
  0xe9   :  { %v3341_v5 = vld [vmem:[#allocation6 + $0x598] sm:$0xf0]  ;;  %v4146_v9 = vld [vmem:[#allocation6 + $0x78c] sm:$0xf] }
  0xea   :  { %1994 = vmatpush.bf16.msra.mxu1 %v2816_v34  ;;  %2007 = vmatpush.bf16.msra.mxu2 %v2944_v35  ;;  %v3264_v34 = vor.u32 %v4062_v19, %v3261_v23  ;;  %v3392_v35 = vor.u32 %v4094_v24, %v3389_v26  ;;  %v4046_v12 = vld [vmem:[#allocation6 + $0x46c] sm:$0xf]  ;;  %v3325_v18 = vld [vmem:[#allocation6 + $0x578] sm:$0xf0] }
  0xeb   :  { %2020 = vmatpush.bf16.msra.mxu3 %v3072_v15  ;;  %v3648_v15 = vor.u32 %v4158_v31, %v3645_v32  ;;  %v4078_v14 = vld [vmem:[#allocation6 + $0x56c] sm:$0xf]  ;;  %v3453_v23 = vld [vmem:[#allocation6 + $0x678] sm:$0xf0] }
  0xec   :  { %1982 = vmatpush.bf16.msra.mxu0 %v2672_v51  ;;  %v3504_v51 = vor.u32 %v4122_v45, %v3501_v46  ;;  %v4110_v19 = vld [vmem:[#allocation6 + $0x66c] sm:$0xf]  ;;  %v3328_v27 = vor.u32 %v4078_v14, %v3325_v18  ;;  %v3565_v40 = vld [vmem:[#allocation6 + $0x758] sm:$0xf0] }
  0xed   :  { %v4142_v24 = vld [vmem:[#allocation6 + $0x76c] sm:$0xf]  ;;  %v3456_v28 = vor.u32 %v4110_v19, %v3453_v23  ;;  %v3165_v48 = vld [vmem:[#allocation6 + $0x438] sm:$0xf0] }
  0xee   :  { %1995 = vmatpush.bf16.msra.mxu1 %v2800_v54  ;;  %2008 = vmatpush.bf16.msra.mxu2 %v2928_v55  ;;  %v3229_v54 = vld [vmem:[#allocation6 + $0x4b8] sm:$0xf0]  ;;  %v4086_v55 = vld [vmem:[#allocation6 + $0x5ac] sm:$0xf] }
  0xef   :  { %2021 = vmatpush.bf16.msra.mxu3 %v3056_v60  ;;  %v4150_v60 = vld [vmem:[#allocation6 + $0x7ac] sm:$0xf]  ;;  %v3232_v62 = vor.u32 %v4054_v53, %v3229_v54  ;;  %v3360_v63 = vor.u32 %v4086_v55, %v3357_v57  ;;  %v3293_v53 = vld [vmem:[#allocation6 + $0x538] sm:$0xf0] }
  0xf0   :  { %1983 = vmatpush.bf16.msra.mxu0 %v2656_v2  ;;  %v3213_v2 = vld [vmem:[#allocation6 + $0x498] sm:$0xf0]  ;;  %v3616_v3 = vor.u32 %v4150_v60, %v3613_v61  ;;  %v4074_v31 = vld [vmem:[#allocation6 + $0x54c] sm:$0xf] }
  0xf1   :  { %v4138_v39 = vld [vmem:[#allocation6 + $0x74c] sm:$0xf]  ;;  %v3421_v55 = vld [vmem:[#allocation6 + $0x638] sm:$0xf0] }
  0xf2   :  { %1996 = vmatpush.bf16.msra.mxu1 %v2784_v7  ;;  %2009 = vmatpush.bf16.msra.mxu2 %v2912_v8  ;;  %v4114_v7 = vld [vmem:[#allocation6 + $0x68c] sm:$0xf]  ;;  %v3469_v8 = vld [vmem:[#allocation6 + $0x698] sm:$0xf0] }
  0xf3   :  { %2022 = vmatpush.bf16.msra.mxu3 %v3040_v13  ;;  %v3472_v11 = vor.u32 %v4114_v7, %v3469_v8  ;;  %v3197_v13 = vld [vmem:[#allocation6 + $0x478] sm:$0xf0]  ;;  %v4038_v47 = vld [vmem:[#allocation6 + $0x42c] sm:$0xf] }
  0xf4   :  { %1984 = vmatpush.bf16.msra.mxu0 %v2640_v25  ;;  %v4476_v10 = vpop.f32.mrf.mxu0  ;;  %v3581_v25 = vld [vmem:[#allocation6 + $0x778] sm:$0xf0]  ;;  %v3200_v26 = vor.u32 %v4046_v12, %v3197_v13  ;;  %v4102_v54 = vld [vmem:[#allocation6 + $0x62c] sm:$0xf]  ;;  %v3168_v59 = vor.u32 %v4038_v47, %v3165_v48  ;;  %v3675_v47 = vld [vmem:[#allocation9 + $0x30] sm:$0xf] }
  0xf5   :  { %v3549_v57 = vld [vmem:[#allocation6 + $0x738] sm:$0xf0]  ;;  %v4034_v60 = vld [vmem:[#allocation6 + $0x40c] sm:$0xf]  ;;  %v1779_v22 = vadd.f32 %v4476_v10, %v350_v58  ;;  %v3763_v10 = vld [vmem:[#allocation9 + $0xe0] sm:$0xf] }
  0xf6   :  { %1997 = vmatpush.bf16.msra.mxu1 %v2768_v29  ;;  %2010 = vmatpush.bf16.msra.mxu2 %v2896_v30  ;;  %v4478_v16 = vpop.f32.mrf.mxu1  ;;  %v4042_v29 = vld [vmem:[#allocation6 + $0x44c] sm:$0xf]  ;;  %v3181_v30 = vld [vmem:[#allocation6 + $0x458] sm:$0xf0]  ;;  %v3667_v58 = vld [vmem:[#allocation9 + $0x20] sm:$0xf] }
  0xf7   :  { %2023 = vmatpush.bf16.msra.mxu3 %v3024_v33  ;;  %1985 = vmatmul.bf16.vlgmr.msra.gmra.mxu0 %v4429_v20  ;;  %v3597_v20 = vld [vmem:[#allocation6 + $0x798] sm:$0xf0]  ;;  %v3584_v33 = vor.u32 %v4142_v24, %v3581_v25  ;;  %v4130_v7 = vld [vmem:[#allocation6 + $0x70c] sm:$0xf]  ;;  %v1792_v23 = vadd.f32 %v4478_v16, %v1779_v22  ;;  %v3699_v24 = vld [vmem:[#allocation9 + $0x60] sm:$0xf] }
  0xf8   :  { %2029 = vmatpush.bf16.msrb.mxu0 %v3264_v34  ;;  %v3600_v17 = vor.u32 %v4146_v9, %v3597_v20  ;;  %v3309_v34 = vld [vmem:[#allocation6 + $0x558] sm:$0xf0]  ;;  %v3707_v20 = vld [vmem:[#allocation9 + $0x70] sm:$0xf]  ;;  %v4174_v25 = vld [vmem:[#allocation9 + $0x64] sm:$0xf0] }
  0xf9   :  { %2011 = vmatmul.bf16.vlgmr.msra.gmra.mxu2 %v4424_v4  ;;  %1998 = vmatmul.bf16.vlgmr.msra.gmra.mxu1 %v4432_v21  ;;  %v4082_v4 = vld [vmem:[#allocation6 + $0x58c] sm:$0xf]  ;;  %v3312_v45 = vor.u32 %v4074_v31, %v3309_v34  ;;  %v3533_v9 = vld [vmem:[#allocation6 + $0x718] sm:$0xf0]  ;;  %v3755_v16 = vld [vmem:[#allocation9 + $0xd0] sm:$0xf] }
  0xfa   :  { %2042 = vmatpush.bf16.msrb.mxu1 %v3392_v35  ;;  %2055 = vmatpush.bf16.msrb.mxu2 %v3520_v36  ;;  %v3344_v21 = vor.u32 %v4082_v4, %v3341_v5  ;;  %v4106_v35 = vld [vmem:[#allocation6 + $0x64c] sm:$0xf]  ;;  %v3437_v36 = vld [vmem:[#allocation6 + $0x658] sm:$0xf0] }
  0xfb   :  { %2068 = vmatpush.bf16.msrb.mxu3 %v3648_v15  ;;  %v3184_v15 = vor.u32 %v4042_v29, %v3181_v30  ;;  %v3440_v46 = vor.u32 %v4106_v35, %v3437_v36  ;;  %v3405_v5 = vld [vmem:[#allocation6 + $0x618] sm:$0xf0]  ;;  %v3691_v30 = vld [vmem:[#allocation9 + $0x50] sm:$0xf] }
  0xfc   :  { %2024 = vmatmul.bf16.vlgmr.msra.gmra.mxu3 %v4426_v6  ;;  %2030 = vmatpush.bf16.msrb.mxu0 %v3248_v49  ;;  %v3216_v6 = vor.u32 %v4050_v1, %v3213_v2  ;;  %v4480_v32 = vpop.f32.mrf.mxu2  ;;  %v1780_v43 = vpop.f32.mrf.mxu0  ;;  %v4070_v49 = vld [vmem:[#allocation6 + $0x52c] sm:$0xf]  ;;  %v3277_v1 = vld [vmem:[#allocation6 + $0x518] sm:$0xf0] }
  0xfd   :  { %v3296_v61 = vor.u32 %v4070_v49, %v3293_v53  ;;  %v4192_v12 = vld [vmem:[#allocation9 + $0xf4] sm:$0xf0] }
  0xfe   :  { %2043 = vmatpush.bf16.msrb.mxu1 %v3376_v50  ;;  %2056 = vmatpush.bf16.msrb.mxu2 %v3504_v51  ;;  %v1793_v50 = vpop.f32.mrf.mxu1  ;;  %v3568_v51 = vor.u32 %v4138_v39, %v3565_v40  ;;  %v4172_v31 = vld [vmem:[#allocation9 + $0x54] sm:$0xf0]  ;;  %v4170_v39 = vld [vmem:[#allocation9 + $0x44] sm:$0xf0] }
  0xff   :  { %2069 = vmatpush.bf16.msrb.mxu3 %v3632_v56  ;;  %v4482_v37 = vpop.f32.mrf.mxu3  ;;  %v4134_v56 = vld [vmem:[#allocation6 + $0x72c] sm:$0xf]  ;;  %v3692_v34 = vor.u32 %v4172_v31, %v3691_v30  ;;  %v3739_v50 = vld [vmem:[#allocation9 + $0xb0] sm:$0xf]  ;;  %v4191_v30 = vld [vmem:[#allocation9 + $0xf4] sm:$0xf] }
 0x100   :  { %2031 = vmatpush.bf16.msrb.mxu0 %v3232_v62  ;;  %v3424_v62 = vor.u32 %v4102_v54, %v3421_v55  ;;  %v3552_v4 = vor.u32 %v4134_v56, %v3549_v57  ;;  %v4186_v40 = vld [vmem:[#allocation9 + $0xc4] sm:$0xf0]  ;;  %v3827_v54 = vld [vmem:[#allocation9 + $0x160] sm:$0xf]  ;;  %v3773_v31 = vld [vmem:[#allocation9 + $0xf8] sm:$0xf0] }
 0x101   :  { %v4206_v55 = vld [vmem:[#allocation9 + $0x164] sm:$0xf0] }
 0x102   :  { %2044 = vmatpush.bf16.msrb.mxu1 %v3360_v63  ;;  %2057 = vmatpush.bf16.msrb.mxu2 %v3488_v0  ;;  %v3149_v63 = vld [vmem:[#allocation6 + $0x418] sm:$0xf0]  ;;  %v4066_v0 = vld [vmem:[#allocation6 + $0x50c] sm:$0xf] }
 0x103   :  { %2070 = vmatpush.bf16.msrb.mxu3 %v3616_v3  ;;  %v4098_v3 = vld [vmem:[#allocation6 + $0x60c] sm:$0xf]  ;;  %v3280_v13 = vor.u32 %v4066_v0, %v3277_v1 }
 0x104   :  { %2032 = vmatpush.bf16.msrb.mxu0 %v3216_v6  ;;  %v1806_v2 = vpop.f32.mrf.mxu2  ;;  %v4176_v6 = vld [vmem:[#allocation9 + $0x74] sm:$0xf0]  ;;  %v3408_v14 = vor.u32 %v4098_v3, %v3405_v5  ;;  %v3819_v3 = vld [vmem:[#allocation9 + $0x150] sm:$0xf] }
 0x105   :  { %v3708_v18 = vor.u32 %v4176_v6, %v3707_v20  ;;  %v4204_v5 = vld [vmem:[#allocation9 + $0x154] sm:$0xf0]  ;;  %v3723_v6 = vld [vmem:[#allocation9 + $0x90] sm:$0xf] }
 0x106   :  { %2045 = vmatpush.bf16.msrb.mxu1 %v3344_v21  ;;  %2058 = vmatpush.bf16.msrb.mxu2 %v3472_v11  ;;  %v3152_v21 = vor.u32 %v4034_v60, %v3149_v63  ;;  %v3771_v11 = vld [vmem:[#allocation9 + $0xf0] sm:$0xf]  ;;  %v3828_v60 = vor.u32 %v4206_v55, %v3827_v54  ;;  %v4182_v63 = vld [vmem:[#allocation9 + $0xa4] sm:$0xf0]  ;;  %v3820_v20 = vor.u32 %v4204_v5, %v3819_v3  ;;  %v4187_v54 = vld [vmem:[#allocation9 + $0xd4] sm:$0xf] }
 0x107   :  { %2071 = vmatpush.bf16.msrb.mxu3 %v3600_v17  ;;  %v1819_v8 = vpop.f32.mrf.mxu3  ;;  %v3536_v17 = vor.u32 %v4130_v7, %v3533_v9  ;;  %v3772_v19 = vor.u32 %v4192_v12, %v3771_v11  ;;  %v4164_v9 = vld [vmem:[#allocation9 + $0x14] sm:$0xf0]  ;;  %v2081_v11 = vmul.f32 0.2, %v4470_v52  ;;  %v3757_v55 = vld [vmem:[#allocation9 + $0xd8] sm:$0xf0] }
 0x108   :  { %2033 = vmatpush.bf16.msrb.mxu0 %v3200_v26  ;;  %v4190_v26 = vld [vmem:[#allocation9 + $0xe4] sm:$0xf0]  ;;  %v3659_v8 = vld [vmem:[#allocation9 + $0x10] sm:$0xf]  ;;  %v3837_v3 = vld [vmem:[#allocation9 + $0x178] sm:$0xf0] }
 0x109   :  { %v3764_v29 = vor.u32 %v4190_v26, %v3763_v10  ;;  %v4178_v26 = vld [vmem:[#allocation9 + $0x84] sm:$0xf0] }
 0x10a   :  { %2046 = vmatpush.bf16.msrb.mxu1 %v3328_v27  ;;  %2059 = vmatpush.bf16.msrb.mxu2 %v3456_v28  ;;  %v3700_v27 = vor.u32 %v4174_v25, %v3699_v24  ;;  %v1805_v28 = vadd.f32 %v4480_v32, %v1792_v23  ;;  %v3747_v32 = vld [vmem:[#allocation9 + $0xc0] sm:$0xf]  ;;  %v4162_v23 = vld [vmem:[#allocation9 + $0x4] sm:$0xf0] }
 0x10b   :  { %2072 = vmatpush.bf16.msrb.mxu3 %v3584_v33  ;;  %v4188_v33 = vld [vmem:[#allocation9 + $0xd4] sm:$0xf0]  ;;  %v3715_v24 = vld [vmem:[#allocation9 + $0x80] sm:$0xf] }
 0x10c   :  { %2034 = vmatpush.bf16.msrb.mxu0 %v3184_v15  ;;  %v1818_v35 = vadd.f32 %v4482_v37, %v1805_v28  ;;  %v3756_v36 = vor.u32 %v4188_v33, %v3755_v16  ;;  %v3709_v28 = vld [vmem:[#allocation9 + $0x78] sm:$0xf0] }
 0x10e   :  { %2047 = vmatpush.bf16.msrb.mxu1 %v3312_v45  ;;  %2060 = vmatpush.bf16.msrb.mxu2 %v3440_v46  ;;  %v4208_v45 = vld [vmem:[#allocation9 + $0x174] sm:$0xf0] }
 0x10f   :  { %2073 = vmatpush.bf16.msrb.mxu3 %v3568_v51  ;;  %v4184_v51 = vld [vmem:[#allocation9 + $0xb4] sm:$0xf0] }
 0x110   :  { %2035 = vmatpush.bf16.msrb.mxu0 %v3168_v59  ;;  %v3740_v56 = vor.u32 %v4184_v51, %v3739_v50  ;;  %v4166_v59 = vld [vmem:[#allocation9 + $0x24] sm:$0xf0]  ;;  %v4196_v50 = vld [vmem:[#allocation9 + $0x114] sm:$0xf0] }
 0x111   :  { %v3668_v1 = vor.u32 %v4166_v59, %v3667_v58  ;;  %v4194_v58 = vld [vmem:[#allocation9 + $0x104] sm:$0xf0] }
 0x112   :  { %2048 = vmatpush.bf16.msrb.mxu1 %v3296_v61  ;;  %2061 = vmatpush.bf16.msrb.mxu2 %v3424_v62  ;;  %v3731_v62 = vld [vmem:[#allocation9 + $0xa0] sm:$0xf] }
 0x113   :  { %2074 = vmatpush.bf16.msrb.mxu3 %v3552_v4  ;;  %v3732_v7 = vor.u32 %v4182_v63, %v3731_v62  ;;  %v3685_v62 = vld [vmem:[#allocation9 + $0x48] sm:$0xf0]  ;;  %v4185_v63 = vld [vmem:[#allocation9 + $0xc4] sm:$0xf] }
 0x114   :  { %2036 = vmatpush.bf16.msrb.mxu0 %v3152_v21  ;;  %v1830_v43 = vpop.f32.mrf.mxu0  ;;  %v4180_v21 = vld [vmem:[#allocation9 + $0x94] sm:$0xf0] }
 0x115   :  { %v1831_v46 = vadd.f32 %v1830_v43, %v1818_v35  ;;  %v4200_v35 = vld [vmem:[#allocation9 + $0x134] sm:$0xf0]  ;;  %v3701_v43 = vld [vmem:[#allocation9 + $0x68] sm:$0xf0] }
 0x116   :  { %2049 = vmatpush.bf16.msrb.mxu1 %v3280_v13  ;;  %2062 = vmatpush.bf16.msrb.mxu2 %v3408_v14  ;;  %v1843_v48 = vpop.f32.mrf.mxu1  ;;  %v3660_v13 = vor.u32 %v4164_v9, %v3659_v8  ;;  %v3811_v14 = vld [vmem:[#allocation9 + $0x140] sm:$0xf]  ;;  %v3677_v8 = vld [vmem:[#allocation9 + $0x38] sm:$0xf0] }
 0x117   :  { %2075 = vmatpush.bf16.msrb.mxu3 %v3536_v17  ;;  %2037 = vmatmul.bf16.vlgmr.msrb.gmra.mxu0 %v4438_v41  ;;  %v3683_v41 = vld [vmem:[#allocation9 + $0x40] sm:$0xf]  ;;  %v1844_v37 = vadd.f32 %v1843_v48, %v1831_v46  ;;  %v4202_v17 = vld [vmem:[#allocation9 + $0x144] sm:$0xf0] }
 0x118   :  { %2483 = vmatpush.bf16.msra.mxu0 %v3708_v18  ;;  %v3684_v15 = vor.u32 %v4170_v39, %v3683_v41  ;;  %v3724_v18 = vor.u32 %v4180_v21, %v3723_v6  ;;  %v3812_v10 = vor.u32 %v4202_v17, %v3811_v14  ;;  %v3716_v41 = vor.u32 %v4178_v26, %v3715_v24  ;;  %v3795_v46 = vld [vmem:[#allocation9 + $0x120] sm:$0xf]  ;;  %v3741_v6 = vld [vmem:[#allocation9 + $0xb8] sm:$0xf0]  ;;  %v4165_v17 = vld [vmem:[#allocation9 + $0x24] sm:$0xf] }
 0x119   :  { %2050 = vmatmul.bf16.vlgmr.msrb.gmra.mxu1 %v4442_v44  ;;  %2063 = vmatmul.bf16.vlgmr.msrb.gmra.mxu2 %v4436_v38  ;;  %v3835_v44 = vld [vmem:[#allocation9 + $0x170] sm:$0xf]  ;;  %v3748_v38 = vor.u32 %v4186_v40, %v3747_v32  ;;  %v3776_v40 = vor.u32 %v4191_v30, %v3773_v31  ;;  %v3733_v24 = vld [vmem:[#allocation9 + $0xa8] sm:$0xf0]  ;;  %v4163_v30 = vld [vmem:[#allocation9 + $0x14] sm:$0xf] }
 0x11a   :  { %2496 = vmatpush.bf16.msra.mxu1 %v3772_v19  ;;  %2076 = vmatmul.bf16.vlgmr.msrb.gmra.mxu3 %v4440_v42  ;;  %v4168_v42 = vld [vmem:[#allocation9 + $0x34] sm:$0xf0]  ;;  %v3836_v49 = vor.u32 %v4208_v45, %v3835_v44  ;;  %v3651_v19 = vld [vmem:[#allocation9] sm:$0xf]  ;;  %v4189_v44 = vld [vmem:[#allocation9 + $0xe4] sm:$0xf] }
 0x11b   :  { %v3676_v53 = vor.u32 %v4168_v42, %v3675_v47  ;;  %v3652_v33 = vor.u32 %v4162_v23, %v3651_v19  ;;  %v3765_v45 = vld [vmem:[#allocation9 + $0xe8] sm:$0xf0]  ;;  %v4198_v47 = vld [vmem:[#allocation9 + $0x124] sm:$0xf0]  ;;  %v4181_v23 = vld [vmem:[#allocation9 + $0xa4] sm:$0xf] }
 0x11c   :  { %2484 = vmatpush.bf16.msra.mxu0 %v3700_v27  ;;  %2509 = vmatpush.bf16.msra.mxu2 %v3836_v49  ;;  %v1856_v57 = vpop.f32.mrf.mxu2  ;;  %v1832_v4 = vpop.f32.mrf.mxu0  ;;  %v4175_v27 = vld [vmem:[#allocation9 + $0x74] sm:$0xf]  ;;  %v3796_v48 = vor.u32 %v4198_v47, %v3795_v46  ;;  %v3787_v49 = vld [vmem:[#allocation9 + $0x110] sm:$0xf]  ;;  %v3768_v51 = vor.u32 %v4189_v44, %v3765_v45  ;;  %v3661_v31 = vld [vmem:[#allocation9 + $0x18] sm:$0xf0] }
 0x11d   :  { %v1857_v61 = vadd.f32 %v1856_v57, %v1844_v37  ;;  %v3712_v39 = vor.u32 %v4175_v27, %v3709_v28  ;;  %v4171_v37 = vld [vmem:[#allocation9 + $0x54] sm:$0xf]  ;;  %v3779_v57 = vld [vmem:[#allocation9 + $0x100] sm:$0xf]  ;;  %v3821_v28 = vld [vmem:[#allocation9 + $0x158] sm:$0xf0] }
 0x11e   :  { %2497 = vmatpush.bf16.msra.mxu1 %v3764_v29  ;;  %v1845_v22 = vpop.f32.mrf.mxu1  ;;  %v4207_v4 = vld [vmem:[#allocation9 + $0x174] sm:$0xf]  ;;  %v4161_v44 = vld [vmem:[#allocation9 + $0x4] sm:$0xf]  ;;  %v3653_v45 = vld [vmem:[#allocation9 + $0x8] sm:$0xf0] }
 0x11f   :  { %v1869_v0 = vpop.f32.mrf.mxu3  ;;  %v3840_v22 = vor.u32 %v4207_v4, %v3837_v3  ;;  %v4203_v27 = vld [vmem:[#allocation9 + $0x154] sm:$0xf]  ;;  %v4177_v47 = vld [vmem:[#allocation9 + $0x84] sm:$0xf]  ;;  %v3781_v3 = vld [vmem:[#allocation9 + $0x108] sm:$0xf0] }
 0x120   :  { %2485 = vmatpush.bf16.msra.mxu0 %v3692_v34  ;;  %2510 = vmatpush.bf16.msra.mxu2 %v3828_v60  ;;  %v1870_v2 = vadd.f32 %v1869_v0, %v1857_v61  ;;  %v3803_v34 = vld [vmem:[#allocation9 + $0x130] sm:$0xf]  ;;  %v3760_v60 = vor.u32 %v4187_v54, %v3757_v55  ;;  %v4169_v61 = vld [vmem:[#allocation9 + $0x44] sm:$0xf]  ;;  %v3749_v0 = vld [vmem:[#allocation9 + $0xc8] sm:$0xf0] }
 0x121   :  { %v3804_v32 = vor.u32 %v4200_v35, %v3803_v34  ;;  %v3752_v5 = vor.u32 %v4185_v63, %v3749_v0  ;;  %v4179_v34 = vld [vmem:[#allocation9 + $0x94] sm:$0xf]  ;;  %v3725_v35 = vld [vmem:[#allocation9 + $0x98] sm:$0xf0]  ;;  %v4197_v55 = vld [vmem:[#allocation9 + $0x124] sm:$0xf] }
 0x122   :  { %2498 = vmatpush.bf16.msra.mxu1 %v3756_v36  ;;  %v2082_v12 = vmul.f32 0.2, %v1870_v2  ;;  %v2085_v36 = vmax.f32 %v4470_v52, %v2081_v11  ;;  %v4195_v63 = vld [vmem:[#allocation9 + $0x114] sm:$0xf]  ;;  %v3789_v0 = vld [vmem:[#allocation9 + $0x118] sm:$0xf0] }
 0x123   :  { %v4193_v4 = vld [vmem:[#allocation9 + $0x104] sm:$0xf] }
 0x124   :  { %2486 = vmatpush.bf16.msra.mxu0 %v3684_v15  ;;  %2511 = vmatpush.bf16.msra.mxu2 %v3820_v20  ;;  %v1858_v25 = vpop.f32.mrf.mxu2  ;;  %v2086_v16 = vmax.f32 %v1870_v2, %v2082_v12  ;;  %v4173_v15 = vld [vmem:[#allocation9 + $0x64] sm:$0xf]  ;;  %v4497_v42 = vpack.c.bf16 %v2085_v36, %v2085_v36  ;;  %v3688_v2 = vor.u32 %v4169_v61, %v3685_v62  ;;  %v4183_v20 = vld [vmem:[#allocation9 + $0xb4] sm:$0xf] }
 0x125   :  { %v3704_v52 = vor.u32 %v4173_v15, %v3701_v43  ;;  %v4205_v12 = vld [vmem:[#allocation9 + $0x164] sm:$0xf]  ;;  %v3744_v14 = vor.u32 %v4183_v20, %v3741_v6  ;;  %v3813_v15 = vld [vmem:[#allocation9 + $0x148] sm:$0xf0]  ;;  %v3728_v43 = vor.u32 %v4179_v34, %v3725_v35 }
 0x126   :  { %2499 = vmatpush.bf16.msra.mxu1 %v3748_v38  ;;  %v4495_v38 = vpack.c.bf16 %v2086_v16, %v2086_v16 }
 0x127   :  { %v1871_v29 = vpop.f32.mrf.mxu3 }
 0x128   :  { %2487 = vmatpush.bf16.msra.mxu0 %v3676_v53  ;;  %2512 = vmatpush.bf16.msra.mxu2 %v3812_v10  ;;  %v3693_v53 = vld [vmem:[#allocation9 + $0x58] sm:$0xf0]  ;;  %v3736_v29 = vor.u32 %v4181_v23, %v3733_v24 }
 0x129   :  { %v3696_v59 = vor.u32 %v4171_v37, %v3693_v53  ;;  %v3656_v53 = vor.u32 %v4161_v44, %v3653_v45  ;;  %v4223_v45 = vld [vmem:[#allocation9 + $0x1f4] sm:$0xf] }
 0x12a   :  { %2500 = vmatpush.bf16.msra.mxu1 %v3740_v56  ;;  %v3788_v56 = vor.u32 %v4196_v50, %v3787_v49  ;;  %v4199_v50 = vld [vmem:[#allocation9 + $0x134] sm:$0xf] }
 0x12c   :  { %2488 = vmatpush.bf16.msra.mxu0 %v3668_v1  ;;  %2513 = vmatpush.bf16.msra.mxu2 %v3804_v32  ;;  %v3780_v1 = vor.u32 %v4194_v58, %v3779_v57  ;;  %v3899_v58 = vld [vmem:[#allocation9 + $0x1f0] sm:$0xf] }
 0x12e   :  { %2501 = vmatpush.bf16.msra.mxu1 %v3732_v7  ;;  %v4167_v7 = vld [vmem:[#allocation9 + $0x34] sm:$0xf] }
 0x12f   :  { %v3680_v11 = vor.u32 %v4167_v7, %v3677_v8 }
 0x130   :  { %2489 = vmatpush.bf16.msra.mxu0 %v3660_v13  ;;  %2514 = vmatpush.bf16.msra.mxu2 %v3796_v48  ;;  %v3829_v13 = vld [vmem:[#allocation9 + $0x168] sm:$0xf0] }
 0x131   :  { %v3832_v19 = vor.u32 %v4205_v12, %v3829_v13  ;;  %v4220_v12 = vld [vmem:[#allocation9 + $0x1d4] sm:$0xf0] }
 0x132   :  { %2502 = vmatpush.bf16.msra.mxu1 %v3724_v18  ;;  %v3669_v18 = vld [vmem:[#allocation9 + $0x28] sm:$0xf0] }
 0x133   :  { %v3672_v26 = vor.u32 %v4165_v17, %v3669_v18  ;;  %v3875_v18 = vld [vmem:[#allocation9 + $0x1c0] sm:$0xf] }
 0x134   :  { %2490 = vmatpush.bf16.msra.mxu0 %v3652_v33  ;;  %2515 = vmatpush.bf16.msra.mxu2 %v3788_v56  ;;  %v1882_v9 = vpop.f32.mrf.mxu0  ;;  %v3824_v33 = vor.u32 %v4203_v27, %v3821_v28  ;;  %v3797_v56 = vld [vmem:[#allocation9 + $0x128] sm:$0xf0] }
 0x136   :  { %2503 = vmatpush.bf16.msra.mxu1 %v3716_v41  ;;  %v1895_v21 = vpop.f32.mrf.mxu1  ;;  %v3664_v41 = vor.u32 %v4163_v30, %v3661_v31  ;;  %v3859_v31 = vld [vmem:[#allocation9 + $0x1a0] sm:$0xf] }
 0x137   :  { %2491 = vmatmul.bf16.vlgmr.msra.gmra.mxu0 %v4497_v42 }
 0x138   :  { %2535 = vmatpush.bf16.msrb.mxu0 %v3712_v39  ;;  %2516 = vmatpush.bf16.msra.mxu2 %v3780_v1  ;;  %v4501_v39 = vld [vmem:[#allocation8] sm:$0xf]  ;;  %v3792_v1 = vor.u32 %v4195_v63, %v3789_v0  ;;  %v4215_v0 = vld [vmem:[#allocation9 + $0x1b4] sm:$0xf] }
 0x139   :  { %2504 = vmatmul.bf16.vlgmr.msra.gmra.mxu1 %v4495_v38  ;;  %v351_v32 = vperm.slane %v4501_v39, 2 }
 0x13a   :  { %2548 = vmatpush.bf16.msrb.mxu1 %v3776_v40  ;;  %v4201_v40 = vld [vmem:[#allocation9 + $0x144] sm:$0xf] }
 0x13b   :  { %v3816_v46 = vor.u32 %v4201_v40, %v3813_v15  ;;  %v1883_v37 = vadd.f32 %v1882_v9, %v351_v32  ;;  %v3891_v9 = vld [vmem:[#allocation9 + $0x1e0] sm:$0xf]  ;;  %v4212_v32 = vld [vmem:[#allocation9 + $0x194] sm:$0xf0] }
 0x13c   :  { %2536 = vmatpush.bf16.msrb.mxu0 %v3704_v52  ;;  %2561 = vmatpush.bf16.msrb.mxu2 %v3840_v22  ;;  %v1908_v25 = vpop.f32.mrf.mxu2  ;;  %v1884_v16 = vpop.f32.mrf.mxu0  ;;  %v3717_v52 = vld [vmem:[#allocation9 + $0x88] sm:$0xf0]  ;;  %v4222_v22 = vld [vmem:[#allocation9 + $0x1e4] sm:$0xf0]  ;;  %v3843_v15 = vld [vmem:[#allocation9 + $0x180] sm:$0xf] }
 0x13d   :  { %v3720_v57 = vor.u32 %v4177_v47, %v3717_v52  ;;  %v1896_v62 = vadd.f32 %v1895_v21, %v1883_v37  ;;  %v3892_v21 = vor.u32 %v4222_v22, %v3891_v9  ;;  %v4214_v16 = vld [vmem:[#allocation9 + $0x1a4] sm:$0xf0]  ;;  %v4211_v9 = vld [vmem:[#allocation9 + $0x194] sm:$0xf]  ;;  %v3853_v22 = vld [vmem:[#allocation9 + $0x198] sm:$0xf0] }
 0x13e   :  { %2549 = vmatpush.bf16.msrb.mxu1 %v3768_v51  ;;  %v1897_v36 = vpop.f32.mrf.mxu1  ;;  %v3805_v51 = vld [vmem:[#allocation9 + $0x138] sm:$0xf0] }
 0x13f   :  { %v1921_v10 = vpop.f32.mrf.mxu3  ;;  %v3808_v54 = vor.u32 %v4199_v50, %v3805_v51  ;;  %v3860_v36 = vor.u32 %v4214_v16, %v3859_v31  ;;  %v3893_v50 = vld [vmem:[#allocation9 + $0x1e8] sm:$0xf0]  ;;  %v2157_v31 = vld [vmem:[%s4523_s4] sm:$0x3] }
 0x140   :  { %2537 = vmatpush.bf16.msrb.mxu0 %v3696_v59  ;;  %2562 = vmatpush.bf16.msrb.mxu2 %v3832_v19  ;;  %v4224_v59 = vld [vmem:[#allocation9 + $0x1f4] sm:$0xf0]  ;;  %v4218_v19 = vld [vmem:[#allocation9 + $0x1c4] sm:$0xf0]  ;;  %v2159_v16 = vperm.slane %v2157_v31, 0 }
 0x141   :  { %v3900_v61 = vor.u32 %v4224_v59, %v3899_v58  ;;  %v3876_v23 = vor.u32 %v4218_v19, %v3875_v18  ;;  %v4217_v59 = vld [vmem:[#allocation9 + $0x1c4] sm:$0xf] }
 0x142   :  { %2550 = vmatpush.bf16.msrb.mxu1 %v3760_v60  ;;  %v3800_v60 = vor.u32 %v4197_v55, %v3797_v56 }
 0x143   :  { %2522 = vmatpush.bf16.msra.mxu3 %v3900_v61 }
 0x144   :  { %2538 = vmatpush.bf16.msrb.mxu0 %v3688_v2  ;;  %2563 = vmatpush.bf16.msrb.mxu2 %v3824_v33  ;;  %v1910_v48 = vpop.f32.mrf.mxu2  ;;  %v1909_v2 = vadd.f32 %v1908_v25, %v1896_v62  ;;  %v352_v62 = vperm.slane %v4501_v39, 3  ;;  %v3845_v39 = vld [vmem:[#allocation9 + $0x188] sm:$0xf0] }
 0x146   :  { %2551 = vmatpush.bf16.msrb.mxu1 %v3752_v5  ;;  %v3784_v5 = vor.u32 %v4193_v4, %v3781_v3  ;;  %v1922_v7 = vadd.f32 %v1921_v10, %v1909_v2  ;;  %v3867_v10 = vld [vmem:[#allocation9 + $0x1b0] sm:$0xf]  ;;  %v4213_v3 = vld [vmem:[#allocation9 + $0x1a4] sm:$0xf] }
 0x147   :  { %v1923_v49 = vpop.f32.mrf.mxu3  ;;  %2523 = vmatpush.bf16.msra.mxu3 %v3892_v21 }
 0x148   :  { %2539 = vmatpush.bf16.msrb.mxu0 %v3680_v11  ;;  %2564 = vmatpush.bf16.msrb.mxu2 %v3816_v46  ;;  %v3883_v11 = vld [vmem:[#allocation9 + $0x1d0] sm:$0xf]  ;;  %v3901_v46 = vld [vmem:[#allocation9 + $0x1f8] sm:$0xf0]  ;;  %v4221_v49 = vld [vmem:[#allocation9 + $0x1e4] sm:$0xf] }
 0x149   :  { %v3884_v13 = vor.u32 %v4220_v12, %v3883_v11  ;;  %v3904_v47 = vor.u32 %v4223_v45, %v3901_v46  ;;  %v3896_v51 = vor.u32 %v4221_v49, %v3893_v50  ;;  %v4209_v11 = vld [vmem:[#allocation9 + $0x184] sm:$0xf] }
 0x14a   :  { %2552 = vmatpush.bf16.msrb.mxu1 %v3744_v14  ;;  %v3848_v12 = vor.u32 %v4209_v11, %v3845_v39 }
 0x14b   :  { %2524 = vmatpush.bf16.msra.mxu3 %v3884_v13 }
 0x14c   :  { %2540 = vmatpush.bf16.msrb.mxu0 %v3672_v26  ;;  %2565 = vmatpush.bf16.msrb.mxu2 %v3808_v54  ;;  %v4216_v26 = vld [vmem:[#allocation9 + $0x1b4] sm:$0xf0]  ;;  %v3885_v54 = vld [vmem:[#allocation9 + $0x1d8] sm:$0xf0] }
 0x14e   :  { %2553 = vmatpush.bf16.msrb.mxu1 %v3736_v29  ;;  %v3868_v29 = vor.u32 %v4216_v26, %v3867_v10 }
 0x14f   :  { %2525 = vmatpush.bf16.msra.mxu3 %v3876_v23 }
 0x150   :  { %2541 = vmatpush.bf16.msrb.mxu0 %v3664_v41  ;;  %2566 = vmatpush.bf16.msrb.mxu2 %v3800_v60  ;;  %v3851_v41 = vld [vmem:[#allocation9 + $0x190] sm:$0xf]  ;;  %v3877_v60 = vld [vmem:[#allocation9 + $0x1c8] sm:$0xf0] }
 0x151   :  { %v3852_v40 = vor.u32 %v4212_v32, %v3851_v41  ;;  %v3880_v61 = vor.u32 %v4217_v59, %v3877_v60 }
 0x152   :  { %2554 = vmatpush.bf16.msrb.mxu1 %v3728_v43  ;;  %v4210_v43 = vld [vmem:[#allocation9 + $0x184] sm:$0xf0] }
 0x153   :  { %2526 = vmatpush.bf16.msra.mxu3 %v3868_v29  ;;  %v3844_v44 = vor.u32 %v4210_v43, %v3843_v15 }
 0x154   :  { %2542 = vmatpush.bf16.msrb.mxu0 %v3656_v53  ;;  %2567 = vmatpush.bf16.msrb.mxu2 %v3792_v1  ;;  %v1934_v8 = vpop.f32.mrf.mxu0  ;;  %v4219_v53 = vld [vmem:[#allocation9 + $0x1d4] sm:$0xf]  ;;  %v3869_v1 = vld [vmem:[#allocation9 + $0x1b8] sm:$0xf0] }
 0x155   :  { %v1935_v20 = vadd.f32 %v1934_v8, %v1922_v7  ;;  %v3888_v56 = vor.u32 %v4219_v53, %v3885_v54  ;;  %v3872_v4 = vor.u32 %v4215_v0, %v3869_v1 }
 0x156   :  { %2555 = vmatpush.bf16.msrb.mxu1 %v3720_v57  ;;  %v1947_v6 = vpop.f32.mrf.mxu1 }
 0x157   :  { %2543 = vmatmul.bf16.vlgmr.msrb.gmra.mxu0 %v4497_v42  ;;  %v1948_v42 = vadd.f32 %v1947_v6, %v1935_v20  ;;  %2527 = vmatpush.bf16.msra.mxu3 %v3860_v36  ;;  %v3856_v6 = vor.u32 %v4211_v9, %v3853_v22 }
 0x158   :  { %2568 = vmatpush.bf16.msrb.mxu2 %v3784_v5  ;;  %v3861_v5 = vld [vmem:[#allocation9 + $0x1a8] sm:$0xf0] }
 0x159   :  { %2556 = vmatmul.bf16.vlgmr.msrb.gmra.mxu1 %v4495_v38  ;;  %v3864_v8 = vor.u32 %v4213_v3, %v3861_v5  ;;  %v2603_v5 = vstv %s4525_s6 }
 0x15b   :  { %2528 = vmatpush.bf16.msra.mxu3 %v3852_v40  ;;  %v2160_v40 = vperm.slane %v2157_v31, 1 }
 0x15c   :  { %v1960_v14 = vpop.f32.mrf.mxu2  ;;  %v1936_v25 = vpop.f32.mrf.mxu0 }
 0x15d   :  { %v1961_v17 = vadd.f32 %v1960_v14, %v1948_v42 }
 0x15e   :  { %v1949_v27 = vpop.f32.mrf.mxu1 }
 0x15f   :  { %v1973_v38 = vpop.f32.mrf.mxu3  ;;  %2529 = vmatpush.bf16.msra.mxu3 %v3844_v44 }
 0x160   :  { %v1974_v24 = vadd.f32 %v1973_v38, %v1961_v17 }
 0x162   :  { %v2083_v28 = vmul.f32 0.2, %v1974_v24 }
 0x163   :  { %2574 = vmatpush.bf16.msrb.mxu3 %v3904_v47 }
 0x164   :  { %v2087_v30 = vmax.f32 %v1974_v24, %v2083_v28  ;;  %v1962_v33 = vpop.f32.mrf.mxu2 }
 0x166   :  { %v2091_v34 = vpack.c.bf16 %v2087_v30, %v2087_v30 }
 0x167   :  { %v1975_v35 = vpop.f32.mrf.mxu3  ;;  %2575 = vmatpush.bf16.msrb.mxu3 %v3896_v51 }
 0x168   :  { %2517 = vmatmul.bf16.vlgmr.msra.gmra.mxu2 %v2091_v34 }
 0x16b   :  { %2576 = vmatpush.bf16.msrb.mxu3 %v3888_v56 }
 0x16f   :  { %2577 = vmatpush.bf16.msrb.mxu3 %v3880_v61 }
 0x173   :  { %2578 = vmatpush.bf16.msrb.mxu3 %v3872_v4 }
 0x174   :  { %v1986_v52 = vpop.f32.mrf.mxu0 }
 0x175   :  { %v1987_v7 = vadd.f32 %v1986_v52, %v352_v62 }
 0x176   :  { %v1999_v48 = vpop.f32.mrf.mxu1 }
 0x177   :  { %v2000_v20 = vadd.f32 %v1999_v48, %v1987_v7  ;;  %2579 = vmatpush.bf16.msrb.mxu3 %v3864_v8 }
 0x178   :  { %2569 = vmatmul.bf16.vlgmr.msrb.gmra.mxu2 %v2091_v34 }
 0x17b   :  { %2580 = vmatpush.bf16.msrb.mxu3 %v3856_v6 }
 0x17c   :  { %v2012_v37 = vpop.f32.mrf.mxu2  ;;  %v1988_v57 = vpop.f32.mrf.mxu0 }
 0x17d   :  { %v2013_v21 = vadd.f32 %v2012_v37, %v2000_v20 }
 0x17e   :  { %v2001_v58 = vpop.f32.mrf.mxu1 }
 0x17f   :  { %v2025_v55 = vpop.f32.mrf.mxu3  ;;  %2581 = vmatpush.bf16.msrb.mxu3 %v3848_v12  ;;  %v2591_v58 = vld [vmem:[%s4524_s5] sm:$0x3]  ;;  %s2613_s5 = sshll.u32 %s4526_s7, 4  ;;  %s2614_s5 = int_to_ptr.hbm [resolvable:$true] %s2613_s5 }
 0x180   :  { %v2026_v42 = vadd.f32 %v2025_v55, %v2013_v21  ;;  %v2593_v62 = vperm.slane %v2591_v58, 0 }
 0x184   :  { %v2014_v63 = vpop.f32.mrf.mxu2 }
 0x185   :  { %v2594_v63 = vperm.slane %v2591_v58, 1 }
 0x187   :  { %v2027_v2 = vpop.f32.mrf.mxu3 }
 0x194   :  { %v2038_v13 = vpop.f32.mrf.mxu0 }
 0x195   :  { %v2039_v17 = vadd.f32 %v2038_v13, %v2026_v42 }
 0x196   :  { %v2051_v14 = vpop.f32.mrf.mxu1 }
 0x197   :  { %v2052_v38 = vadd.f32 %v2051_v14, %v2039_v17 }
 0x19c   :  { %v2064_v18 = vpop.f32.mrf.mxu2  ;;  %v2040_v24 = vpop.f32.mrf.mxu0 }
 0x19d   :  { %v2065_v19 = vadd.f32 %v2064_v18, %v2052_v38  ;;  %v2077_v23 = vpop.f32.mrf.mxu3 }
 0x19e   :  { %v2053_v25 = vpop.f32.mrf.mxu1 }
 0x19f   :  { %v2078_v10 = vadd.f32 %v2077_v23, %v2065_v19 }
 0x1a1   :  { %v2084_v26 = vmul.f32 0.2, %v2078_v10 }
 0x1a3   :  { %v2088_v27 = vmax.f32 %v2078_v10, %v2084_v26 }
 0x1a4   :  { %v2066_v28 = vpop.f32.mrf.mxu2 }
 0x1a5   :  { %v2092_v29 = vpack.c.bf16 %v2088_v27, %v2088_v27  ;;  %v2079_v30 = vpop.f32.mrf.mxu3 }
 0x1a7   :  { %2530 = vmatmul.bf16.vlgmr.msra.gmra.mxu3 %v2092_v29 }
 0x1b4   :  { %v2492_v33 = vpop.f32.mrf.mxu0 }
 0x1b5   :  { %v2493_v34 = vadd.f32 %v2492_v33, %v2159_v16 }
 0x1b6   :  { %v2505_v35 = vpop.f32.mrf.mxu1 }
 0x1b7   :  { %v2506_v36 = vadd.f32 %v2505_v35, %v2493_v34  ;;  %2582 = vmatmul.bf16.vlgmr.msrb.gmra.mxu3 %v2092_v29 }
 0x1bc   :  { %v2494_v41 = vpop.f32.mrf.mxu0 }
 0x1be   :  { %v2507_v32 = vpop.f32.mrf.mxu1 }
 0x1d4   :  { %v2544_v15 = vpop.f32.mrf.mxu0 }
 0x1d5   :  { %v2545_v43 = vadd.f32 %v2544_v15, %v2160_v40 }
 0x1d6   :  { %v2557_v44 = vpop.f32.mrf.mxu1 }
 0x1d7   :  { %v2558_v45 = vadd.f32 %v2557_v44, %v2545_v43 }
 0x1dc   :  { %v2546_v46 = vpop.f32.mrf.mxu0 }
 0x1de   :  { %v2559_v47 = vpop.f32.mrf.mxu1 }
 0x1eb   :  { %v2518_v52 = vpop.f32.mrf.mxu2 }
 0x1ec   :  { %v2519_v48 = vadd.f32 %v2518_v52, %v2506_v36 }
 0x1f3   :  { %v2520_v49 = vpop.f32.mrf.mxu2 }
 0x1fb   :  { %v2570_v50 = vpop.f32.mrf.mxu2 }
 0x1fc   :  { %v2571_v55 = vadd.f32 %v2570_v50, %v2558_v45 }
 0x203   :  { %v2572_v51 = vpop.f32.mrf.mxu2 }
 0x22a   :  { %v2531_v37 = vpop.f32.mrf.mxu3 }
 0x22b   :  { %v2532_v54 = vadd.f32 %v2531_v37, %v2519_v48 }
 0x22d   :  { %v2587_v56 = vmul.f32 0.2, %v2532_v54 }
 0x22f   :  { %v2589_v60 = vmax.f32 %v2532_v54, %v2587_v56 }
 0x231   :  { %v2597_v1 = vmul.f32 %v2593_v62, %v2589_v60 }
 0x232   :  { %v2533_v53 = vpop.f32.mrf.mxu3 }
 0x23a   :  { %v2583_v57 = vpop.f32.mrf.mxu3 }
 0x23b   :  { %v2584_v59 = vadd.f32 %v2583_v57, %v2571_v55 }
 0x23d   :  { %v2588_v61 = vmul.f32 0.2, %v2584_v59 }
 0x23f   :  { %v2590_v0 = vmax.f32 %v2584_v59, %v2588_v61 }
 0x241   :  { %v2598_v2 = vmul.f32 %v2594_v63, %v2590_v0 }
 0x242   :  { %v2585_v4 = vpop.f32.mrf.mxu3 }
 0x243   :  { %v2599_v3 = vadd.f32 %v2598_v2, %v2597_v1 }
 0x245   :  { %2600 = vadd.xlane.f32.xlu0 %v2599_v3 }
 0x2b8   :  { %v2601_v7 = vpop.xlane.xlu0 %2600 }
 0x2b9   :  { %v2604_v8 = vadd.f32 %v2603_v5, %v2601_v7 }
 0x2bb   :  { %2605 = vst [vmem:[#allocation11] sm:$0xff] %v2604_v8 }
 0x2bc   :  { %2616 = dma.vmem_to_hbm [thread:$0]  %s2612_s27, 128, %s2614_s5, [#allocation5]  }
 0x2bd   :  { %4361 = dma.done.wait [#allocation5], 128  }
 0x2be   :  { %4362 = vsyncadd [#allocation5], 4294967168 }
 0x2bf   :  { %2621 = vsyncpa [#allocation4], 1 }
 0x2c0   :  { %2622 = vsyncpa [#allocation7], 1 }
 0x2c1   :  { %2623 = vsyncpa [#allocation10], 1 }
 0x2c2   :  { %2624 = vsyncpa [#allocation5], 1 }

</bundles_post_ra>
